<compile_context>
chip_gen: v7x
topology: tpu7x:2x2x1
jax: 0.10.0
libtpu: 0.0.40
codegen_flags: <defaults>
</compile_context>

<pallas_src>
import math
from functools import partial

import jax
import jax.numpy as jnp
import numpy as np
from jax.experimental import pallas as pl
from jax.experimental.pallas import tpu as pltpu


# ----------------------------- Pallas kernel --------------------------------
def _axial_attention_kernel(
    x_ref, w_ref, q_emb_ref, k_emb_ref, v_emb_ref, epi_ref, o_ref,
    *, groups, gp, N, out_planes, batch_block,
):
    G, OP, BB = groups, out_planes, batch_block
    gph = gp // 2
    OPh = OP // 2
    HI = jax.lax.Precision.HIGHEST

    x = x_ref[...]                         # (C+1, BB*N), columns ordered (b, n)
    w = w_ref[...]                         # (3*OP, C+1), bias folded in last col

    # Fused qkv Conv1d + bn_qkv + all per-branch scale folds: one lane-dense
    # MXU matmul over the whole batch block.
    qkv = jnp.dot(w, x, preferred_element_type=jnp.float32, precision=HI)   # (3*OP, BB*N)

    q_emb = q_emb_ref[...]                 # (gph, N, N)
    k_emb = k_emb_ref[...]                 # (gph, N, N)
    v_emb = v_emb_ref[...]                 # (gp,  N, N)
    sve_scale = epi_ref[0]                 # (OP, 1)  = f_sve * bn_out odd-channel scale
    out_bias = epi_ref[1]                  # (OP, 1)  = bn_out even+odd shifts

    for b in range(BB):                    # static unroll over the batch block
        qkv_b = qkv[:, b * N:(b + 1) * N]  # (3*OP, N)
        for g in range(G):
            r = g * gph
            q_qk = qkv_b[r:r + gph, :]                                 # q                (gph, N)
            k_qk = qkv_b[OPh + r:OPh + r + gph, :]                     # k * s_qk
            q_qr = qkv_b[2 * OPh + r:2 * OPh + r + gph, :]             # q * s_qr * f_qr
            k_kr = qkv_b[3 * OPh + r:3 * OPh + r + gph, :]             # k * s_kr * f_kr
            v_sv = qkv_b[4 * OPh + g * gp:4 * OPh + (g + 1) * gp, :]   # v * so_sv * f_sv (gp, N)

            # qk[i,j] = sum_c q[c,i] * (k*s_qk)[c,j]                 -> MXU
            qk = jnp.einsum('ci,cj->ij', q_qk, k_qk,
                            preferred_element_type=jnp.float32, precision=HI)   # (N, N)
            # qr[i,j] = sum_c (q*s_qr*f_qr)[c,i] * q_emb[c,i,j]
            #   per-i batched, contraction depth gph, no operand reuse along j:
            #   small (gph, N, N) VPU reduce per group (no (G,gp,N,N) tensor).
            qr = jnp.sum(q_qr[:, :, None] * q_emb, axis=0)                       # (N, N)
            # kr[i,j] = sum_c (k*s_kr*f_kr)[c,j] * k_emb[c,j,i]  (torch .transpose(2,3))
            kr = jnp.sum(k_kr[:, :, None] * k_emb, axis=0).T                     # (N, N)

            # bn_similarity scales are folded into the operands above; its
            # per-group shift is constant over the softmax axis j -> cancels.
            logits = qk + qr + kr
            m = jnp.max(logits, axis=-1, keepdims=True)
            e = jnp.exp(logits - m)
            p = e * pl.reciprocal(jnp.sum(e, axis=-1, keepdims=True), approx=True)  # softmax_j

            # sv[c,i] = sum_j p[i,j] * (v*so_sv*f_sv)[c,j]           -> MXU
            sv = jnp.einsum('cj,ij->ci', v_sv, p,
                            preferred_element_type=jnp.float32, precision=HI)    # (gp, N)
            # sve[c,i] = sum_j p[i,j] * v_emb[c,i,j]   (per-i batched, zero reuse)
            sve = jnp.sum(p[None, :, :] * v_emb, axis=-1)                         # (gp, N)

            out_g = (sv
                     + sve * sve_scale[g * gp:(g + 1) * gp]
                     + out_bias[g * gp:(g + 1) * gp])                             # (gp, N)
            o_ref[g * gp:(g + 1) * gp, b * N:(b + 1) * N] = out_g.astype(o_ref.dtype)


# ------------------------------- parameters ---------------------------------
def make_params(key, in_planes, out_planes, groups, kernel_size):
    gp = out_planes // groups
    ks = jax.random.split(key, 5)
    p = {}
    p["w_qkv"] = (jax.random.normal(ks[0], (2 * out_planes, in_planes), jnp.float32)
                  * math.sqrt(1.0 / in_planes))
    p["relative"] = (jax.random.normal(ks[1], (2 * gp, 2 * kernel_size - 1), jnp.float32)
                     * math.sqrt(1.0 / gp))

    def bn(kk, c, prefix):
        k1, k2, k3, k4 = jax.random.split(kk, 4)
        p[prefix + "_gamma"] = 1.0 + 0.1 * jax.random.normal(k1, (c,), jnp.float32)
        p[prefix + "_beta"] = 0.1 * jax.random.normal(k2, (c,), jnp.float32)
        p[prefix + "_mean"] = 0.1 * jax.random.normal(k3, (c,), jnp.float32)
        p[prefix + "_var"] = 1.0 + 0.1 * jnp.abs(jax.random.normal(k4, (c,), jnp.float32))

    bn(ks[2], 2 * out_planes, "bn_qkv")
    bn(ks[3], 3 * groups, "bn_sim")
    bn(ks[4], 2 * out_planes, "bn_out")
    return p


def _fold_bn(params, prefix, eps=1e-5):
    g, b, m, v = (params[prefix + s] for s in ("_gamma", "_beta", "_mean", "_var"))
    scale = g * jax.lax.rsqrt(v + eps)
    return scale, b - m * scale


# ------------------------------- wrapper -------------------------------------
def axial_attention_forward(x_bnc, params, *, in_planes, out_planes, groups, kernel_size):
    B, N, C = x_bnc.shape
    assert N == kernel_size and C == in_planes
    G, OP = groups, out_planes
    gp = OP // G
    gph = gp // 2
    OPh = OP // 2
    f_qr, f_kr, f_sve, f_sv = 0.1, 0.1, 0.1, 1.0
    BB = B                      # whole batch in one grid step (lane-dense)

    # --- fold all BatchNorms (inference mode) into per-channel scale/shift ---
    qkv_scale, qkv_shift = _fold_bn(params, "bn_qkv")     # (2*OP,)
    sim_scale, _sim_shift = _fold_bn(params, "bn_sim")    # (3*G,)  shift cancels in softmax
    out_scale, out_shift = _fold_bn(params, "bn_out")     # (2*OP,)

    # channel bookkeeping: qkv channel = g*(2*gp) + t, t in [q | k | v]
    ch = np.arange(2 * OP).reshape(G, 2 * gp)
    q_rows = ch[:, :gph].reshape(-1)          # (OPh,) ordered (g, c)
    k_rows = ch[:, gph:gp].reshape(-1)        # (OPh,)
    v_rows = ch[:, gp:].reshape(-1)           # (OP,)  ordered (g, c) == output channel order

    W = params["w_qkv"] * qkv_scale[:, None]  # bn_qkv scale folded into weight rows
    bias = qkv_shift                          # bn_qkv shift

    s_qk, s_qr, s_kr = sim_scale[:G], sim_scale[G:2 * G], sim_scale[2 * G:]
    so_sv, so_sve = out_scale[0::2], out_scale[1::2]
    b_out = out_shift[0::2] + out_shift[1::2]

    # Augmented weight: separate (pre-scaled) row blocks for each use of q/k/v.
    blocks = [
        (q_rows, jnp.ones((OPh,), jnp.float32)),       # q            (for qk)
        (k_rows, jnp.repeat(s_qk, gph)),               # k * s_qk     (for qk)
        (q_rows, jnp.repeat(s_qr, gph) * f_qr),        # q * s_qr*f_qr (for qr)
        (k_rows, jnp.repeat(s_kr, gph) * f_kr),        # k * s_kr*f_kr (for kr)
        (v_rows, so_sv * f_sv),                        # v * so_sv*f_sv (for sv)
    ]
    W_aug = jnp.concatenate([W[r] * s[:, None] for r, s in blocks], axis=0)   # (3*OP, C)
    b_aug = jnp.concatenate([bias[r] * s for r, s in blocks], axis=0)         # (3*OP,)
    w_full = jnp.concatenate([W_aug, b_aug[:, None]], axis=1)                 # (3*OP, C+1)

    # relative positional embeddings (gather = parameter setup glue)
    qi = jnp.arange(N)[None, :]
    ki = jnp.arange(N)[:, None]
    rel_idx = (ki - qi + N - 1).reshape(-1)
    all_emb = jnp.take(params["relative"], rel_idx, axis=1).reshape(2 * gp, N, N)
    q_emb = all_emb[:gph]
    k_emb = all_emb[gph:gp]
    v_emb = all_emb[gp:]

    # consolidated epilogue constants: [0] sve per-channel scale, [1] output bias
    epi = jnp.stack([so_sve * f_sve, b_out], axis=0).reshape(2, OP, 1).astype(jnp.float32)

    # x: (B, N, C) -> lane-dense (C+1, B*N), columns ordered (b, n), ones row for bias
    x_cbn = jnp.transpose(x_bnc, (2, 0, 1)).reshape(C, B * N).astype(jnp.float32)
    x_aug = jnp.concatenate([x_cbn, jnp.ones((1, B * N), jnp.float32)], axis=0)

    kernel = partial(
        _axial_attention_kernel,
        groups=G, gp=gp, N=N, out_planes=OP, batch_block=BB,
    )

    out_flat = pl.pallas_call(
        kernel,
        out_shape=jax.ShapeDtypeStruct((OP, B * N), jnp.float32),
        grid=(B // BB,),
        in_specs=[
            pl.BlockSpec((C + 1, BB * N), lambda m: (0, m)),    # x (lane-dense)
            pl.BlockSpec((3 * OP, C + 1), lambda m: (0, 0)),    # augmented weight (+bias col)
            pl.BlockSpec((gph, N, N), lambda m: (0, 0, 0)),     # q_embedding
            pl.BlockSpec((gph, N, N), lambda m: (0, 0, 0)),     # k_embedding
            pl.BlockSpec((gp, N, N), lambda m: (0, 0, 0)),      # v_embedding
            pl.BlockSpec((2, OP, 1), lambda m: (0, 0, 0)),      # epilogue constants
        ],
        out_specs=pl.BlockSpec((OP, BB * N), lambda m: (0, m)),
        compiler_params=pltpu.CompilerParams(dimension_semantics=("parallel",)),
    )(x_aug, w_full, q_emb, k_emb, v_emb, epi)

    # (OP, B*N) lane-dense kernel output -> (B, OP, N) as in the torch module
    return jnp.transpose(out_flat.reshape(OP, B, N), (1, 0, 2))


# --------------------------- pure-JAX reference ------------------------------
def reference_forward(x_bnc, params, *, in_planes, out_planes, groups, kernel_size):
    HI = jax.lax.Precision.HIGHEST
    B, N, C = x_bnc.shape
    G, OP = groups, out_planes
    gp = OP // G
    gph = gp // 2
    qs, qb = _fold_bn(params, "bn_qkv")
    ss, sb = _fold_bn(params, "bn_sim")
    osc, osh = _fold_bn(params, "bn_out")

    x = jnp.transpose(x_bnc, (0, 2, 1))                             # (B,C,N)
    qkv = jnp.einsum("oc,bcn->bon", params["w_qkv"], x, precision=HI)
    qkv = qkv * qs[None, :, None] + qb[None, :, None]
    qkv = qkv.reshape(B, G, 2 * gp, N)
    q, k, v = qkv[:, :, :gph], qkv[:, :, gph:gp], qkv[:, :, gp:]

    qi = jnp.arange(N)[None, :]
    ki = jnp.arange(N)[:, None]
    rel_idx = (ki - qi + N - 1).reshape(-1)
    all_emb = jnp.take(params["relative"], rel_idx, axis=1).reshape(2 * gp, N, N)
    q_emb, k_emb, v_emb = all_emb[:gph], all_emb[gph:gp], all_emb[gp:]

    qr = jnp.einsum("bgci,cij->bgij", q, q_emb, precision=HI) * 0.1
    kr = jnp.einsum("bgci,cij->bgij", k, k_emb, precision=HI).transpose(0, 1, 3, 2) * 0.1
    qk = jnp.einsum("bgci,bgcj->bgij", q, k, precision=HI)

    s_qk, s_qr, s_kr = ss[:G], ss[G:2 * G], ss[2 * G:]
    b_sum = sb[:G] + sb[G:2 * G] + sb[2 * G:]
    sim_pre = (qk * s_qk[None, :, None, None] + qr * s_qr[None, :, None, None]
               + kr * s_kr[None, :, None, None] + b_sum[None, :, None, None])
    sim = jax.nn.softmax(sim_pre, axis=3)

    sv = jnp.einsum("bgij,bgcj->bgci", sim, v, precision=HI) * 1.0
    sve = jnp.einsum("bgij,cij->bgci", sim, v_emb, precision=HI) * 0.1
    sv = sv.reshape(B, OP, N)
    sve = sve.reshape(B, OP, N)
    out = (sv * osc[0::2][None, :, None] + osh[0::2][None, :, None]
           + sve * osc[1::2][None, :, None] + osh[1::2][None, :, None])
    return out


# --------------------------------- main ---------------------------------------
if __name__ == "__main__":
    B, N = 2, 16                 # kernel_size == axial sequence length N
    in_planes, out_planes, groups = 8, 8, 2

    key = jax.random.PRNGKey(0)
    k_x, k_p = jax.random.split(key)
    x = jax.random.normal(k_x, (B, N, in_planes), dtype=jnp.float32)
    params = make_params(k_p, in_planes, out_planes, groups, N)

    out = axial_attention_forward(
        x, params, in_planes=in_planes, out_planes=out_planes,
        groups=groups, kernel_size=N)
    out = jax.block_until_ready(out)

    ref = reference_forward(
        x, params, in_planes=in_planes, out_planes=out_planes,
        groups=groups, kernel_size=N)
    ref = jax.block_until_ready(ref)

    assert out.shape == (B, out_planes, N)
    np.testing.assert_allclose(np.asarray(out), np.asarray(ref), atol=1e-2, rtol=1e-2)
    print("KERNEL_OK")
</pallas_src>

<mosaic_0001>
module attributes {stable_mosaic.version = 11 : i64} {
  func.func @_axial_attention_kernel(%arg0: i32, %arg1: memref<9x32xf32, #tpu.memory_space<vmem>>, %arg2: memref<24x9xf32, #tpu.memory_space<vmem>>, %arg3: memref<2x16x16xf32, #tpu.memory_space<vmem>>, %arg4: memref<2x16x16xf32, #tpu.memory_space<vmem>>, %arg5: memref<4x16x16xf32, #tpu.memory_space<vmem>>, %arg6: memref<2x8x1xf32, #tpu.memory_space<vmem>>, %arg7: memref<8x32xf32, #tpu.memory_space<vmem>>) attributes {dimension_semantics = [#tpu.dimension_semantics<parallel>], iteration_bounds = array<i64: 1>, scalar_prefetch = 0 : i64, scratch_operands = 0 : i64, tpu.core_type = #tpu.core_type<tc>, window_params = [{transform_indices = @transform_0, window_bounds = array<i64: 9, 32>}, {pipeline_mode = #tpu.pipeline_mode<synchronous>, transform_indices = @transform_1, window_bounds = array<i64: 24, 9>}, {pipeline_mode = #tpu.pipeline_mode<synchronous>, transform_indices = @transform_2, window_bounds = array<i64: 2, 16, 16>}, {pipeline_mode = #tpu.pipeline_mode<synchronous>, transform_indices = @transform_3, window_bounds = array<i64: 2, 16, 16>}, {pipeline_mode = #tpu.pipeline_mode<synchronous>, transform_indices = @transform_4, window_bounds = array<i64: 4, 16, 16>}, {pipeline_mode = #tpu.pipeline_mode<synchronous>, transform_indices = @transform_5, window_bounds = array<i64: 2, 8, 1>}, {transform_indices = @transform_6, window_bounds = array<i64: 8, 32>}]} {
    %c0 = arith.constant 0 : index
    %c0_0 = arith.constant 0 : index
    %0 = vector.load %arg1[%c0, %c0_0] : memref<9x32xf32, #tpu.memory_space<vmem>>, vector<9x32xf32>
    %c0_1 = arith.constant 0 : index
    %c0_2 = arith.constant 0 : index
    %1 = vector.load %arg2[%c0_1, %c0_2] : memref<24x9xf32, #tpu.memory_space<vmem>>, vector<24x9xf32>
    %cst = arith.constant dense<0.000000e+00> : vector<24x32xf32>
    %2 = tpu.matmul %1, %0, %cst {dimension_numbers = #tpu.dot_dimension_numbers<[1], [0], [0], [1], [0, 0, 1, 1], [], []>, precision = #tpu.contract_precision<fp32>} : vector<24x9xf32>, vector<9x32xf32>, vector<24x32xf32> -> vector<24x32xf32>
    %c0_3 = arith.constant 0 : index
    %c0_4 = arith.constant 0 : index
    %c0_5 = arith.constant 0 : index
    %3 = vector.load %arg3[%c0_3, %c0_4, %c0_5] : memref<2x16x16xf32, #tpu.memory_space<vmem>>, vector<2x16x16xf32>
    %c0_6 = arith.constant 0 : index
    %c0_7 = arith.constant 0 : index
    %c0_8 = arith.constant 0 : index
    %4 = vector.load %arg4[%c0_6, %c0_7, %c0_8] : memref<2x16x16xf32, #tpu.memory_space<vmem>>, vector<2x16x16xf32>
    %c0_9 = arith.constant 0 : index
    %c0_10 = arith.constant 0 : index
    %c0_11 = arith.constant 0 : index
    %5 = vector.load %arg5[%c0_9, %c0_10, %c0_11] : memref<4x16x16xf32, #tpu.memory_space<vmem>>, vector<4x16x16xf32>
    %c0_12 = arith.constant 0 : index
    %c0_13 = arith.constant 0 : index
    %c0_14 = arith.constant 0 : index
    %6 = vector.load %arg6[%c0_12, %c0_13, %c0_14] : memref<2x8x1xf32, #tpu.memory_space<vmem>>, vector<1x8x1xf32>
    %7 = vector.shape_cast %6 : vector<1x8x1xf32> to vector<8x1xf32>
    %c1 = arith.constant 1 : index
    %c0_15 = arith.constant 0 : index
    %c0_16 = arith.constant 0 : index
    %8 = vector.load %arg6[%c1, %c0_15, %c0_16] : memref<2x8x1xf32, #tpu.memory_space<vmem>>, vector<1x8x1xf32>
    %9 = vector.shape_cast %8 : vector<1x8x1xf32> to vector<8x1xf32>
    %10 = vector.extract_strided_slice %2 {offsets = [0, 0], sizes = [24, 16], strides = [1, 1]} : vector<24x32xf32> to vector<24x16xf32>
    %11 = vector.extract_strided_slice %10 {offsets = [0, 0], sizes = [2, 16], strides = [1, 1]} : vector<24x16xf32> to vector<2x16xf32>
    %12 = vector.extract_strided_slice %10 {offsets = [4, 0], sizes = [2, 16], strides = [1, 1]} : vector<24x16xf32> to vector<2x16xf32>
    %13 = vector.extract_strided_slice %10 {offsets = [8, 0], sizes = [2, 16], strides = [1, 1]} : vector<24x16xf32> to vector<2x16xf32>
    %14 = vector.extract_strided_slice %10 {offsets = [12, 0], sizes = [2, 16], strides = [1, 1]} : vector<24x16xf32> to vector<2x16xf32>
    %15 = vector.extract_strided_slice %10 {offsets = [16, 0], sizes = [4, 16], strides = [1, 1]} : vector<24x16xf32> to vector<4x16xf32>
    "tpu.trace_start"() <{level = 10 : i32, message = "ci,cj->ij"}> : () -> ()
    %cst_17 = arith.constant dense<0.000000e+00> : vector<16x16xf32>
    %16 = tpu.matmul %11, %12, %cst_17 {dimension_numbers = #tpu.dot_dimension_numbers<[0], [0], [1], [1], [0, 1, 1, 1], [], []>, precision = #tpu.contract_precision<fp32>} : vector<2x16xf32>, vector<2x16xf32>, vector<16x16xf32> -> vector<16x16xf32>
    "tpu.trace_stop"() : () -> ()
    %17 = vector.shape_cast %13 : vector<2x16xf32> to vector<2x16x1xf32>
    %18 = vector.broadcast %17 : vector<2x16x1xf32> to vector<2x16x16xf32>
    %19 = arith.mulf %18, %3 : vector<2x16x16xf32>
    %cst_18 = arith.constant dense<0.000000e+00> : vector<16x16xf32>
    %20 = vector.multi_reduction <add>, %19, %cst_18 [0] : vector<2x16x16xf32> to vector<16x16xf32>
    %21 = vector.shape_cast %14 : vector<2x16xf32> to vector<2x16x1xf32>
    %22 = vector.broadcast %21 : vector<2x16x1xf32> to vector<2x16x16xf32>
    %23 = arith.mulf %22, %4 : vector<2x16x16xf32>
    %cst_19 = arith.constant dense<0.000000e+00> : vector<16x16xf32>
    %24 = vector.multi_reduction <add>, %23, %cst_19 [0] : vector<2x16x16xf32> to vector<16x16xf32>
    %25 = tpu.transpose %24, [1, 0] : vector<16x16xf32> -> vector<16x16xf32>
    %26 = arith.addf %16, %20 : vector<16x16xf32>
    %27 = arith.addf %26, %25 : vector<16x16xf32>
    %cst_20 = arith.constant dense<0xFF800000> : vector<16xf32>
    %28 = vector.multi_reduction <maximumf>, %27, %cst_20 [1] : vector<16x16xf32> to vector<16xf32>
    %29 = vector.shape_cast %28 : vector<16xf32> to vector<16x1xf32>
    %30 = vector.broadcast %29 : vector<16x1xf32> to vector<16x16xf32>
    %31 = arith.subf %27, %30 : vector<16x16xf32>
    %32 = math.exp %31 : vector<16x16xf32>
    %cst_21 = arith.constant dense<0.000000e+00> : vector<16xf32>
    %33 = vector.multi_reduction <add>, %32, %cst_21 [1] : vector<16x16xf32> to vector<16xf32>
    %34 = vector.shape_cast %33 : vector<16xf32> to vector<16x1xf32>
    %35 = tpu.reciprocal %34 {approx = true} : vector<16x1xf32> -> vector<16x1xf32>
    %36 = vector.broadcast %35 : vector<16x1xf32> to vector<16x16xf32>
    %37 = arith.mulf %32, %36 : vector<16x16xf32>
    "tpu.trace_start"() <{level = 10 : i32, message = "cj,ij->ci"}> : () -> ()
    %cst_22 = arith.constant dense<0.000000e+00> : vector<4x16xf32>
    %38 = tpu.matmul %15, %37, %cst_22 {dimension_numbers = #tpu.dot_dimension_numbers<[1], [1], [0], [0], [0, 0, 1, 0], [], []>, precision = #tpu.contract_precision<fp32>} : vector<4x16xf32>, vector<16x16xf32>, vector<4x16xf32> -> vector<4x16xf32>
    "tpu.trace_stop"() : () -> ()
    %39 = vector.shape_cast %37 : vector<16x16xf32> to vector<1x16x16xf32>
    %40 = vector.broadcast %39 : vector<1x16x16xf32> to vector<4x16x16xf32>
    %41 = arith.mulf %40, %5 : vector<4x16x16xf32>
    %cst_23 = arith.constant dense<0.000000e+00> : vector<4x16xf32>
    %42 = vector.multi_reduction <add>, %41, %cst_23 [2] : vector<4x16x16xf32> to vector<4x16xf32>
    %43 = vector.extract_strided_slice %7 {offsets = [0, 0], sizes = [4, 1], strides = [1, 1]} : vector<8x1xf32> to vector<4x1xf32>
    %44 = vector.broadcast %43 : vector<4x1xf32> to vector<4x16xf32>
    %45 = arith.mulf %42, %44 : vector<4x16xf32>
    %46 = arith.addf %38, %45 : vector<4x16xf32>
    %47 = vector.extract_strided_slice %9 {offsets = [0, 0], sizes = [4, 1], strides = [1, 1]} : vector<8x1xf32> to vector<4x1xf32>
    %48 = vector.broadcast %47 : vector<4x1xf32> to vector<4x16xf32>
    %49 = arith.addf %46, %48 : vector<4x16xf32>
    %c0_24 = arith.constant 0 : index
    %c0_25 = arith.constant 0 : index
    %50 = vector.load %arg7[%c0_24, %c0_25] : memref<8x32xf32, #tpu.memory_space<vmem>>, vector<4x16xf32>
    tpu.vector_store %arg7[%c0_24, %c0_25], %49 {strides = array<i32>} : memref<8x32xf32, #tpu.memory_space<vmem>>, vector<4x16xf32>,
    %51 = vector.extract_strided_slice %10 {offsets = [2, 0], sizes = [2, 16], strides = [1, 1]} : vector<24x16xf32> to vector<2x16xf32>
    %52 = vector.extract_strided_slice %10 {offsets = [6, 0], sizes = [2, 16], strides = [1, 1]} : vector<24x16xf32> to vector<2x16xf32>
    %53 = vector.extract_strided_slice %10 {offsets = [10, 0], sizes = [2, 16], strides = [1, 1]} : vector<24x16xf32> to vector<2x16xf32>
    %54 = vector.extract_strided_slice %10 {offsets = [14, 0], sizes = [2, 16], strides = [1, 1]} : vector<24x16xf32> to vector<2x16xf32>
    %55 = vector.extract_strided_slice %10 {offsets = [20, 0], sizes = [4, 16], strides = [1, 1]} : vector<24x16xf32> to vector<4x16xf32>
    "tpu.trace_start"() <{level = 10 : i32, message = "ci,cj->ij"}> : () -> ()
    %cst_26 = arith.constant dense<0.000000e+00> : vector<16x16xf32>
    %56 = tpu.matmul %51, %52, %cst_26 {dimension_numbers = #tpu.dot_dimension_numbers<[0], [0], [1], [1], [0, 1, 1, 1], [], []>, precision = #tpu.contract_precision<fp32>} : vector<2x16xf32>, vector<2x16xf32>, vector<16x16xf32> -> vector<16x16xf32>
    "tpu.trace_stop"() : () -> ()
    %57 = vector.shape_cast %53 : vector<2x16xf32> to vector<2x16x1xf32>
    %58 = vector.broadcast %57 : vector<2x16x1xf32> to vector<2x16x16xf32>
    %59 = arith.mulf %58, %3 : vector<2x16x16xf32>
    %cst_27 = arith.constant dense<0.000000e+00> : vector<16x16xf32>
    %60 = vector.multi_reduction <add>, %59, %cst_27 [0] : vector<2x16x16xf32> to vector<16x16xf32>
    %61 = vector.shape_cast %54 : vector<2x16xf32> to vector<2x16x1xf32>
    %62 = vector.broadcast %61 : vector<2x16x1xf32> to vector<2x16x16xf32>
    %63 = arith.mulf %62, %4 : vector<2x16x16xf32>
    %cst_28 = arith.constant dense<0.000000e+00> : vector<16x16xf32>
    %64 = vector.multi_reduction <add>, %63, %cst_28 [0] : vector<2x16x16xf32> to vector<16x16xf32>
    %65 = tpu.transpose %64, [1, 0] : vector<16x16xf32> -> vector<16x16xf32>
    %66 = arith.addf %56, %60 : vector<16x16xf32>
    %67 = arith.addf %66, %65 : vector<16x16xf32>
    %cst_29 = arith.constant dense<0xFF800000> : vector<16xf32>
    %68 = vector.multi_reduction <maximumf>, %67, %cst_29 [1] : vector<16x16xf32> to vector<16xf32>
    %69 = vector.shape_cast %68 : vector<16xf32> to vector<16x1xf32>
    %70 = vector.broadcast %69 : vector<16x1xf32> to vector<16x16xf32>
    %71 = arith.subf %67, %70 : vector<16x16xf32>
    %72 = math.exp %71 : vector<16x16xf32>
    %cst_30 = arith.constant dense<0.000000e+00> : vector<16xf32>
    %73 = vector.multi_reduction <add>, %72, %cst_30 [1] : vector<16x16xf32> to vector<16xf32>
    %74 = vector.shape_cast %73 : vector<16xf32> to vector<16x1xf32>
    %75 = tpu.reciprocal %74 {approx = true} : vector<16x1xf32> -> vector<16x1xf32>
    %76 = vector.broadcast %75 : vector<16x1xf32> to vector<16x16xf32>
    %77 = arith.mulf %72, %76 : vector<16x16xf32>
    "tpu.trace_start"() <{level = 10 : i32, message = "cj,ij->ci"}> : () -> ()
    %cst_31 = arith.constant dense<0.000000e+00> : vector<4x16xf32>
    %78 = tpu.matmul %55, %77, %cst_31 {dimension_numbers = #tpu.dot_dimension_numbers<[1], [1], [0], [0], [0, 0, 1, 0], [], []>, precision = #tpu.contract_precision<fp32>} : vector<4x16xf32>, vector<16x16xf32>, vector<4x16xf32> -> vector<4x16xf32>
    "tpu.trace_stop"() : () -> ()
    %79 = vector.shape_cast %77 : vector<16x16xf32> to vector<1x16x16xf32>
    %80 = vector.broadcast %79 : vector<1x16x16xf32> to vector<4x16x16xf32>
    %81 = arith.mulf %80, %5 : vector<4x16x16xf32>
    %cst_32 = arith.constant dense<0.000000e+00> : vector<4x16xf32>
    %82 = vector.multi_reduction <add>, %81, %cst_32 [2] : vector<4x16x16xf32> to vector<4x16xf32>
    %83 = vector.extract_strided_slice %7 {offsets = [4, 0], sizes = [4, 1], strides = [1, 1]} : vector<8x1xf32> to vector<4x1xf32>
    %84 = vector.broadcast %83 : vector<4x1xf32> to vector<4x16xf32>
    %85 = arith.mulf %82, %84 : vector<4x16xf32>
    %86 = arith.addf %78, %85 : vector<4x16xf32>
    %87 = vector.extract_strided_slice %9 {offsets = [4, 0], sizes = [4, 1], strides = [1, 1]} : vector<8x1xf32> to vector<4x1xf32>
    %88 = vector.broadcast %87 : vector<4x1xf32> to vector<4x16xf32>
    %89 = arith.addf %86, %88 : vector<4x16xf32>
    %c4 = arith.constant 4 : index
    %c0_33 = arith.constant 0 : index
    %90 = vector.load %arg7[%c4, %c0_33] : memref<8x32xf32, #tpu.memory_space<vmem>>, vector<4x16xf32>
    tpu.vector_store %arg7[%c4, %c0_33], %89 {strides = array<i32>} : memref<8x32xf32, #tpu.memory_space<vmem>>, vector<4x16xf32>,
    %91 = vector.extract_strided_slice %2 {offsets = [0, 16], sizes = [24, 16], strides = [1, 1]} : vector<24x32xf32> to vector<24x16xf32>
    %92 = vector.extract_strided_slice %91 {offsets = [0, 0], sizes = [2, 16], strides = [1, 1]} : vector<24x16xf32> to vector<2x16xf32>
    %93 = vector.extract_strided_slice %91 {offsets = [4, 0], sizes = [2, 16], strides = [1, 1]} : vector<24x16xf32> to vector<2x16xf32>
    %94 = vector.extract_strided_slice %91 {offsets = [8, 0], sizes = [2, 16], strides = [1, 1]} : vector<24x16xf32> to vector<2x16xf32>
    %95 = vector.extract_strided_slice %91 {offsets = [12, 0], sizes = [2, 16], strides = [1, 1]} : vector<24x16xf32> to vector<2x16xf32>
    %96 = vector.extract_strided_slice %91 {offsets = [16, 0], sizes = [4, 16], strides = [1, 1]} : vector<24x16xf32> to vector<4x16xf32>
    "tpu.trace_start"() <{level = 10 : i32, message = "ci,cj->ij"}> : () -> ()
    %cst_34 = arith.constant dense<0.000000e+00> : vector<16x16xf32>
    %97 = tpu.matmul %92, %93, %cst_34 {dimension_numbers = #tpu.dot_dimension_numbers<[0], [0], [1], [1], [0, 1, 1, 1], [], []>, precision = #tpu.contract_precision<fp32>} : vector<2x16xf32>, vector<2x16xf32>, vector<16x16xf32> -> vector<16x16xf32>
    "tpu.trace_stop"() : () -> ()
    %98 = vector.shape_cast %94 : vector<2x16xf32> to vector<2x16x1xf32>
    %99 = vector.broadcast %98 : vector<2x16x1xf32> to vector<2x16x16xf32>
    %100 = arith.mulf %99, %3 : vector<2x16x16xf32>
    %cst_35 = arith.constant dense<0.000000e+00> : vector<16x16xf32>
    %101 = vector.multi_reduction <add>, %100, %cst_35 [0] : vector<2x16x16xf32> to vector<16x16xf32>
    %102 = vector.shape_cast %95 : vector<2x16xf32> to vector<2x16x1xf32>
    %103 = vector.broadcast %102 : vector<2x16x1xf32> to vector<2x16x16xf32>
    %104 = arith.mulf %103, %4 : vector<2x16x16xf32>
    %cst_36 = arith.constant dense<0.000000e+00> : vector<16x16xf32>
    %105 = vector.multi_reduction <add>, %104, %cst_36 [0] : vector<2x16x16xf32> to vector<16x16xf32>
    %106 = tpu.transpose %105, [1, 0] : vector<16x16xf32> -> vector<16x16xf32>
    %107 = arith.addf %97, %101 : vector<16x16xf32>
    %108 = arith.addf %107, %106 : vector<16x16xf32>
    %cst_37 = arith.constant dense<0xFF800000> : vector<16xf32>
    %109 = vector.multi_reduction <maximumf>, %108, %cst_37 [1] : vector<16x16xf32> to vector<16xf32>
    %110 = vector.shape_cast %109 : vector<16xf32> to vector<16x1xf32>
    %111 = vector.broadcast %110 : vector<16x1xf32> to vector<16x16xf32>
    %112 = arith.subf %108, %111 : vector<16x16xf32>
    %113 = math.exp %112 : vector<16x16xf32>
    %cst_38 = arith.constant dense<0.000000e+00> : vector<16xf32>
    %114 = vector.multi_reduction <add>, %113, %cst_38 [1] : vector<16x16xf32> to vector<16xf32>
    %115 = vector.shape_cast %114 : vector<16xf32> to vector<16x1xf32>
    %116 = tpu.reciprocal %115 {approx = true} : vector<16x1xf32> -> vector<16x1xf32>
    %117 = vector.broadcast %116 : vector<16x1xf32> to vector<16x16xf32>
    %118 = arith.mulf %113, %117 : vector<16x16xf32>
    "tpu.trace_start"() <{level = 10 : i32, message = "cj,ij->ci"}> : () -> ()
    %cst_39 = arith.constant dense<0.000000e+00> : vector<4x16xf32>
    %119 = tpu.matmul %96, %118, %cst_39 {dimension_numbers = #tpu.dot_dimension_numbers<[1], [1], [0], [0], [0, 0, 1, 0], [], []>, precision = #tpu.contract_precision<fp32>} : vector<4x16xf32>, vector<16x16xf32>, vector<4x16xf32> -> vector<4x16xf32>
    "tpu.trace_stop"() : () -> ()
    %120 = vector.shape_cast %118 : vector<16x16xf32> to vector<1x16x16xf32>
    %121 = vector.broadcast %120 : vector<1x16x16xf32> to vector<4x16x16xf32>
    %122 = arith.mulf %121, %5 : vector<4x16x16xf32>
    %cst_40 = arith.constant dense<0.000000e+00> : vector<4x16xf32>
    %123 = vector.multi_reduction <add>, %122, %cst_40 [2] : vector<4x16x16xf32> to vector<4x16xf32>
    %124 = vector.extract_strided_slice %7 {offsets = [0, 0], sizes = [4, 1], strides = [1, 1]} : vector<8x1xf32> to vector<4x1xf32>
    %125 = vector.broadcast %124 : vector<4x1xf32> to vector<4x16xf32>
    %126 = arith.mulf %123, %125 : vector<4x16xf32>
    %127 = arith.addf %119, %126 : vector<4x16xf32>
    %128 = vector.extract_strided_slice %9 {offsets = [0, 0], sizes = [4, 1], strides = [1, 1]} : vector<8x1xf32> to vector<4x1xf32>
    %129 = vector.broadcast %128 : vector<4x1xf32> to vector<4x16xf32>
    %130 = arith.addf %127, %129 : vector<4x16xf32>
    %c0_41 = arith.constant 0 : index
    %c16 = arith.constant 16 : index
    %131 = vector.load %arg7[%c0_41, %c16] : memref<8x32xf32, #tpu.memory_space<vmem>>, vector<4x16xf32>
    tpu.vector_store %arg7[%c0_41, %c16], %130 {strides = array<i32>} : memref<8x32xf32, #tpu.memory_space<vmem>>, vector<4x16xf32>,
    %132 = vector.extract_strided_slice %91 {offsets = [2, 0], sizes = [2, 16], strides = [1, 1]} : vector<24x16xf32> to vector<2x16xf32>
    %133 = vector.extract_strided_slice %91 {offsets = [6, 0], sizes = [2, 16], strides = [1, 1]} : vector<24x16xf32> to vector<2x16xf32>
    %134 = vector.extract_strided_slice %91 {offsets = [10, 0], sizes = [2, 16], strides = [1, 1]} : vector<24x16xf32> to vector<2x16xf32>
    %135 = vector.extract_strided_slice %91 {offsets = [14, 0], sizes = [2, 16], strides = [1, 1]} : vector<24x16xf32> to vector<2x16xf32>
    %136 = vector.extract_strided_slice %91 {offsets = [20, 0], sizes = [4, 16], strides = [1, 1]} : vector<24x16xf32> to vector<4x16xf32>
    "tpu.trace_start"() <{level = 10 : i32, message = "ci,cj->ij"}> : () -> ()
    %cst_42 = arith.constant dense<0.000000e+00> : vector<16x16xf32>
    %137 = tpu.matmul %132, %133, %cst_42 {dimension_numbers = #tpu.dot_dimension_numbers<[0], [0], [1], [1], [0, 1, 1, 1], [], []>, precision = #tpu.contract_precision<fp32>} : vector<2x16xf32>, vector<2x16xf32>, vector<16x16xf32> -> vector<16x16xf32>
    "tpu.trace_stop"() : () -> ()
    %138 = vector.shape_cast %134 : vector<2x16xf32> to vector<2x16x1xf32>
    %139 = vector.broadcast %138 : vector<2x16x1xf32> to vector<2x16x16xf32>
    %140 = arith.mulf %139, %3 : vector<2x16x16xf32>
    %cst_43 = arith.constant dense<0.000000e+00> : vector<16x16xf32>
    %141 = vector.multi_reduction <add>, %140, %cst_43 [0] : vector<2x16x16xf32> to vector<16x16xf32>
    %142 = vector.shape_cast %135 : vector<2x16xf32> to vector<2x16x1xf32>
    %143 = vector.broadcast %142 : vector<2x16x1xf32> to vector<2x16x16xf32>
    %144 = arith.mulf %143, %4 : vector<2x16x16xf32>
    %cst_44 = arith.constant dense<0.000000e+00> : vector<16x16xf32>
    %145 = vector.multi_reduction <add>, %144, %cst_44 [0] : vector<2x16x16xf32> to vector<16x16xf32>
    %146 = tpu.transpose %145, [1, 0] : vector<16x16xf32> -> vector<16x16xf32>
    %147 = arith.addf %137, %141 : vector<16x16xf32>
    %148 = arith.addf %147, %146 : vector<16x16xf32>
    %cst_45 = arith.constant dense<0xFF800000> : vector<16xf32>
    %149 = vector.multi_reduction <maximumf>, %148, %cst_45 [1] : vector<16x16xf32> to vector<16xf32>
    %150 = vector.shape_cast %149 : vector<16xf32> to vector<16x1xf32>
    %151 = vector.broadcast %150 : vector<16x1xf32> to vector<16x16xf32>
    %152 = arith.subf %148, %151 : vector<16x16xf32>
    %153 = math.exp %152 : vector<16x16xf32>
    %cst_46 = arith.constant dense<0.000000e+00> : vector<16xf32>
    %154 = vector.multi_reduction <add>, %153, %cst_46 [1] : vector<16x16xf32> to vector<16xf32>
    %155 = vector.shape_cast %154 : vector<16xf32> to vector<16x1xf32>
    %156 = tpu.reciprocal %155 {approx = true} : vector<16x1xf32> -> vector<16x1xf32>
    %157 = vector.broadcast %156 : vector<16x1xf32> to vector<16x16xf32>
    %158 = arith.mulf %153, %157 : vector<16x16xf32>
    "tpu.trace_start"() <{level = 10 : i32, message = "cj,ij->ci"}> : () -> ()
    %cst_47 = arith.constant dense<0.000000e+00> : vector<4x16xf32>
    %159 = tpu.matmul %136, %158, %cst_47 {dimension_numbers = #tpu.dot_dimension_numbers<[1], [1], [0], [0], [0, 0, 1, 0], [], []>, precision = #tpu.contract_precision<fp32>} : vector<4x16xf32>, vector<16x16xf32>, vector<4x16xf32> -> vector<4x16xf32>
    "tpu.trace_stop"() : () -> ()
    %160 = vector.shape_cast %158 : vector<16x16xf32> to vector<1x16x16xf32>
    %161 = vector.broadcast %160 : vector<1x16x16xf32> to vector<4x16x16xf32>
    %162 = arith.mulf %161, %5 : vector<4x16x16xf32>
    %cst_48 = arith.constant dense<0.000000e+00> : vector<4x16xf32>
    %163 = vector.multi_reduction <add>, %162, %cst_48 [2] : vector<4x16x16xf32> to vector<4x16xf32>
    %164 = vector.extract_strided_slice %7 {offsets = [4, 0], sizes = [4, 1], strides = [1, 1]} : vector<8x1xf32> to vector<4x1xf32>
    %165 = vector.broadcast %164 : vector<4x1xf32> to vector<4x16xf32>
    %166 = arith.mulf %163, %165 : vector<4x16xf32>
    %167 = arith.addf %159, %166 : vector<4x16xf32>
    %168 = vector.extract_strided_slice %9 {offsets = [4, 0], sizes = [4, 1], strides = [1, 1]} : vector<8x1xf32> to vector<4x1xf32>
    %169 = vector.broadcast %168 : vector<4x1xf32> to vector<4x16xf32>
    %170 = arith.addf %167, %169 : vector<4x16xf32>
    %c4_49 = arith.constant 4 : index
    %c16_50 = arith.constant 16 : index
    %171 = vector.load %arg7[%c4_49, %c16_50] : memref<8x32xf32, #tpu.memory_space<vmem>>, vector<4x16xf32>
    tpu.vector_store %arg7[%c4_49, %c16_50], %170 {strides = array<i32>} : memref<8x32xf32, #tpu.memory_space<vmem>>, vector<4x16xf32>,
    return
  }
  func.func @transform_0(%arg0: i32) -> (i32, i32) {
    %c0_i32 = arith.constant 0 : i32
    %c0_i32_0 = arith.constant 0 : i32
    return %c0_i32, %arg0 : i32, i32
  }
  func.func @transform_1(%arg0: i32) -> (i32, i32) {
    %c0_i32 = arith.constant 0 : i32
    %c0_i32_0 = arith.constant 0 : i32
    %c0_i32_1 = arith.constant 0 : i32
    return %c0_i32, %c0_i32_0 : i32, i32
  }
  func.func @transform_2(%arg0: i32) -> (i32, i32, i32) {
    %c0_i32 = arith.constant 0 : i32
    %c0_i32_0 = arith.constant 0 : i32
    %c0_i32_1 = arith.constant 0 : i32
    %c0_i32_2 = arith.constant 0 : i32
    return %c0_i32, %c0_i32_0, %c0_i32_1 : i32, i32, i32
  }
  func.func @transform_3(%arg0: i32) -> (i32, i32, i32) {
    %c0_i32 = arith.constant 0 : i32
    %c0_i32_0 = arith.constant 0 : i32
    %c0_i32_1 = arith.constant 0 : i32
    %c0_i32_2 = arith.constant 0 : i32
    return %c0_i32, %c0_i32_0, %c0_i32_1 : i32, i32, i32
  }
  func.func @transform_4(%arg0: i32) -> (i32, i32, i32) {
    %c0_i32 = arith.constant 0 : i32
    %c0_i32_0 = arith.constant 0 : i32
    %c0_i32_1 = arith.constant 0 : i32
    %c0_i32_2 = arith.constant 0 : i32
    return %c0_i32, %c0_i32_0, %c0_i32_1 : i32, i32, i32
  }
  func.func @transform_5(%arg0: i32) -> (i32, i32, i32) {
    %c0_i32 = arith.constant 0 : i32
    %c0_i32_0 = arith.constant 0 : i32
    %c0_i32_1 = arith.constant 0 : i32
    %c0_i32_2 = arith.constant 0 : i32
    return %c0_i32, %c0_i32_0, %c0_i32_1 : i32, i32, i32
  }
  func.func @transform_6(%arg0: i32) -> (i32, i32) {
    %c0_i32 = arith.constant 0 : i32
    %c0_i32_0 = arith.constant 0 : i32
    return %c0_i32, %arg0 : i32, i32
  }
}

</mosaic_0001>

<bundles_post_ra>
// kernel: tpu_custom_call.1
= control target key start
LH: loop header
LB: loop body
LE: loop exit
PB: predicated region body
PF: predicated region fallthrough
CT: control target
= control target key end

     0   :  { %11 = vsyncpa [#allocation3], 0  ;;  %s7410_s0 = inlined_call_operand.hbm [shape: f32[9,32], index: 0, kind: input, shape index: {}]   ;;  %s7411_s1 = inlined_call_operand.vmem [shape: f32[24,9], index: 1, kind: input, shape index: {}]   ;;  %s7412_s2 = inlined_call_operand.hbm [shape: f32[2,16,16], index: 2, kind: input, shape index: {}]   ;;  %s7413_s3 = inlined_call_operand.hbm [shape: f32[2,16,16], index: 3, kind: input, shape index: {}]   ;;  %s7414_s4 = inlined_call_operand.vmem [shape: f32[4,16,16], index: 4, kind: input, shape index: {}]   ;;  %s7415_s5 = inlined_call_operand.vmem [shape: f32[2,8,1], index: 5, kind: input, shape index: {}]   ;;  %s7416_s6 = inlined_call_operand.hbm [shape: f32[8,32], index: 6, kind: output, shape index: {}]  }
   0x1   :  { %12 = vsyncpa [#allocation6], 0 }
   0x2   :  { %13 = vsyncpa [#allocation4], 0  ;;  %s6505_s21 = smov [#allocation5]   ;;  %s6506_s23 = smov [#allocation2]  }
   0x3   :  { %s33_s22 = sshll.u32 %s6505_s21, 4  ;;  %s19_s24 = sshll.u32 %s6506_s23, 4  ;;  %s34_s22 = int_to_ptr.vmem [resolvable:$true] %s33_s22  ;;  %s6552_s24 = int_to_ptr.vmem [resolvable:$true] %s19_s24 }
   0x4   :  { %s6411_s27 = scalar_lea.hbm %s7412_s2, 512 }
   0x5   :  { %p6412_p0 = scmp.ne.s32.totalorder %s7412_s2, %s6411_s27  ;;  %p6415_p1 = scmp.lt.u32.totalorder %s6411_s27, %s7412_s2 }
   0x7   :  { %p6417_p2 = pnand %p6415_p1, %p6412_p0 }
   0x9   :  { %6420 = shalt.err (!%p6417_p2)
}
   0xa   :  { %s6421_s8 = scalar_lea.vmem %s34_s22, 512  ;;  %p6426_p4 = scmp.lt.s32.totalorder %s34_s22, %s34_s22 }
   0xb   :  { %p6422_p3 = scmp.ne.s32.totalorder %s34_s22, %s6421_s8  ;;  %p6427_p5 = scmp.lt.s32.totalorder %s6421_s8, %s6421_s8 }
   0xd   :  { %p6428_p6 = por %p6427_p5, %p6426_p4 }
   0xf   :  { %p6429_p7 = pnand %p6428_p6, %p6422_p3 }
  0x11   :  { %6432 = shalt.err (!%p6429_p7)
}
  0x12   :  { %s6507_s9 = smov 128   ;;  %s6508_s10 = smov 8  }
  0x13   :  { %39 = dma.hbm_to_vmem [thread:$0]  %s7412_s2, 512, %s34_s22, [#allocation6], %s6507_s9, %s6507_s9, %s6508_s10  }
  0x14   :  { %s6433_s15 = scalar_lea.hbm %s7410_s0, 256 }
  0x15   :  { %p6434_p8 = scmp.ne.s32.totalorder %s7410_s0, %s6433_s15  ;;  %p6437_p9 = scmp.lt.u32.totalorder %s6433_s15, %s7410_s0 }
  0x17   :  { %p6439_p10 = pnand %p6437_p9, %p6434_p8 }
  0x19   :  { %6442 = shalt.err (!%p6439_p10)
}
  0x1a   :  { %s6443_s20 = scalar_lea.vmem %s6552_s24, 256  ;;  %p6448_p12 = scmp.lt.s32.totalorder %s6552_s24, %s6552_s24 }
  0x1b   :  { %p6444_p11 = scmp.ne.s32.totalorder %s6552_s24, %s6443_s20  ;;  %p6449_p13 = scmp.lt.s32.totalorder %s6443_s20, %s6443_s20 }
  0x1d   :  { %p6450_p0 = por %p6449_p13, %p6448_p12 }
  0x1f   :  { %p6451_p1 = pnand %p6450_p0, %p6444_p11 }
  0x21   :  { %6454 = shalt.err (!%p6451_p1)
}
  0x22   :  { %25 = dma.hbm_to_vmem [thread:$0]  %s7410_s0, 256, %s6552_s24, [#allocation3], %s6507_s9, %s6507_s9, %s6508_s10  }
  0x23   :  { %s6509_s22 = smov [#allocation7]   ;;  %s6455_s27 = scalar_lea.hbm %s7413_s3, 512 }
  0x24   :  { %s45_s23 = sshll.u32 %s6509_s22, 4  ;;  %p6456_p2 = scmp.ne.s32.totalorder %s7413_s3, %s6455_s27  ;;  %s46_s23 = int_to_ptr.vmem [resolvable:$true] %s45_s23 }
  0x25   :  { %p6459_p3 = scmp.lt.u32.totalorder %s6455_s27, %s7413_s3 }
  0x27   :  { %p6461_p4 = pnand %p6459_p3, %p6456_p2 }
  0x29   :  { %6464 = shalt.err (!%p6461_p4)
}
  0x2a   :  { %s6465_s8 = scalar_lea.vmem %s46_s23, 512  ;;  %p6470_p6 = scmp.lt.s32.totalorder %s46_s23, %s46_s23 }
  0x2b   :  { %p6466_p5 = scmp.ne.s32.totalorder %s46_s23, %s6465_s8  ;;  %p6471_p7 = scmp.lt.s32.totalorder %s6465_s8, %s6465_s8 }
  0x2d   :  { %p6472_p8 = por %p6471_p7, %p6470_p6 }
  0x2f   :  { %p6473_p9 = pnand %p6472_p8, %p6466_p5 }
  0x31   :  { %6476 = shalt.err (!%p6473_p9)
}
  0x32   :  { %51 = dma.hbm_to_vmem [thread:$0]  %s7413_s3, 512, %s46_s23, [#allocation6], %s6507_s9, %s6507_s9, %s6508_s10  }
  0x33   :  { %6499 = dma.done.wait [#allocation3], 256  }
  0x34   :  { %6500 = vsyncadd [#allocation3], 4294967040 }
  0x35   :  { %6501 = dma.done.wait [#allocation6], 1024  }
  0x36   :  { %6502 = vsyncadd [#allocation6], 4294966272  ;;  %v6510_v0 = vmov 0.0|0.0   ;;  %vm6511_vm0 = vmmov 0   ;;  %v6512_v1 = vmov 0.0   ;;  %vm80_vm1 = vcmask 1040384  }
  0x37   :  { %6193 = vmatprep.subr.bf16.mxu0 %v6510_v0  ;;  %5831 = vmatprep.mubr.msk.f32.mxu0 %vm6511_vm0, %v6512_v1  ;;  %vm70_vm2 = vcmask 72704   ;;  %v65_v2 = vld [vmem:[#allocation2] sm:$0xff]  ;;  %v66_v3 = vld [vmem:[#allocation2 + $0x8] sm:$0x1]  ;;  %v69_v9 = vld [vmem:[%s7411_s1 + $0x10] sm:$0xff]  ;;  %v648_v40 = vlaneseq  ;;  %vm786_vm3 = vcmask 1041408  }
  0x38   :  { %v67_v4 = vld [vmem:[%s7411_s1] sm:$0xff]  ;;  %v82_v5 = vsel %vm80_vm1, %v66_v3, 0  ;;  %v85_v6 = vand.u32 4294901760, %v65_v2  ;;  %v68_v8 = vld [vmem:[%s7411_s1 + $0x8] sm:$0xff]  ;;  %v78_v13 = vsel %vm70_vm2, %v69_v9, 0  ;;  %vm779_vm4 = vcmask 15360  }
  0x39   :  { %v72_v7 = vsel %vm70_vm2, %v67_v4, 0  ;;  %v88_v10 = vand.u32 4294901760, %v82_v5  ;;  %v75_v12 = vsel %vm70_vm2, %v68_v8, 0  ;;  %v6620_v16 = vand.u32 4294901760, %v78_v13  ;;  %s6513_s1 = smov 112   ;;  %s6516_s0 = smov [#allocation8]  }
  0x3a   :  { %v6616_v11 = vand.u32 4294901760, %v72_v7  ;;  %v183_v14 = vsub.f32 %v65_v2, %v85_v6  ;;  %v6618_v15 = vand.u32 4294901760, %v75_v12  ;;  %v6676_v41 = vshrl.u32 %v648_v40, 7  ;;  %s5642_s24 = sshll.u32 %s6516_s0, 4  ;;  %s5643_s24 = int_to_ptr.vmem [resolvable:$true] %s5642_s24 }
  0x3b   :  { %v6194_v17 = vpack.c.bf16 %v88_v10, %v85_v6  ;;  %v190_v18 = vsub.f32 %v82_v5, %v88_v10  ;;  %v172_v22 = vsub.f32 %v78_v13, %v6620_v16  ;;  %v1399_v42 = vand.u32 127, %v648_v40  ;;  %v6762_v40 = vld [vmem:[#allocation5 + $0x18] sm:$0xff]  ;;  %s6477_s11 = scalar_lea.vmem %s5643_s24, 128  ;;  %p6482_p11 = scmp.lt.s32.totalorder %s5643_s24, %s5643_s24 }
  0x3c   :  { %v152_v19 = vsub.f32 %v72_v7, %v6616_v11  ;;  %v184_v20 = vand.u32 4294901760, %v183_v14  ;;  %v162_v21 = vsub.f32 %v75_v12, %v6618_v15  ;;  %v7419_v49 = vsub.s32 5, %v6676_v41  ;;  %p6478_p10 = scmp.ne.s32.totalorder %s5643_s24, %s6477_s11  ;;  %p6483_p12 = scmp.lt.s32.totalorder %s6477_s11, %s6477_s11 }
  0x3d   :  { %6195 = vmatpush3.bf16.msra.mxu0 %v6194_v17  ;;  %v191_v24 = vand.u32 4294901760, %v190_v18  ;;  %v173_v29 = vand.u32 4294901760, %v172_v22  ;;  %v6200_v38 = vpack.c.bf16 %v190_v18, %v183_v14  ;;  %v6679_v43 = vsub.s32 %v1399_v42, %v6676_v41 }
  0x3e   :  { %v153_v23 = vand.u32 4294901760, %v152_v19  ;;  %6196 = vmatprep.subr.bf16.mxu0 %v6510_v0  ;;  %v185_v25 = vsub.f32 %v183_v14, %v184_v20  ;;  %v163_v26 = vand.u32 4294901760, %v162_v21  ;;  %v1404_v44 = vadd.s32 4294967288, %v1399_v42  ;;  %p6484_p13 = por %p6483_p12, %p6482_p11 }
  0x3f   :  { %v192_v28 = vsub.f32 %v190_v18, %v191_v24  ;;  %v174_v36 = vsub.f32 %v172_v22, %v173_v29  ;;  %v6206_v39 = vpack.c.bf16 %v191_v24, %v184_v20  ;;  %v7420_v55 = vsub.s32 4, %v6676_v41  ;;  %v6743_v24 = vld [vmem:[#allocation7 + $0x18] sm:$0xff] }
  0x40   :  { %v154_v27 = vsub.f32 %v152_v19, %v153_v23  ;;  %v186_v30 = vand.u32 4294901760, %v185_v25  ;;  %v164_v31 = vsub.f32 %v162_v21, %v163_v26  ;;  %v6682_v45 = vsub.s32 %v1404_v44, %v6676_v41  ;;  %v6764_v44 = vld [vmem:[#allocation5 + $0x10] sm:$0xff]  ;;  %p6485_p0 = pnand %p6484_p13, %p6478_p10 }
  0x41   :  { %v193_v33 = vand.u32 4294901760, %v192_v28  ;;  %v175_v37 = vand.u32 4294901760, %v174_v36  ;;  %v650_v63 = vsub.s32 0, %v6676_v41  ;;  %v661_v3 = vsub.s32 1, %v6676_v41 }
  0x42   :  { %v155_v32 = vand.u32 4294901760, %v154_v27  ;;  %v165_v35 = vand.u32 4294901760, %v164_v31  ;;  %v6745_v27 = vld [vmem:[#allocation7 + $0x8] sm:$0xff]  ;;  %vm674_vm5 = vcmask 130048   ;;  %vm1409_vm6 = vcmask 130112  }
  0x43   :  { %v6197_v34 = vpack.c.bf16 %v193_v33, %v186_v30  ;;  %vm1438_vm7 = vcmask 1041409   ;;  %vm1440_vm8 = vcmask 1042434   ;;  %vm1442_vm9 = vcmask 1043459  }
  0x44   :  { %5832 = vmatmul.mubr.f32.vlgmr.msra.gmra.mrb[0].mxu0 %v155_v32  ;;  %vm1919_vm10 = vcmask 125952   ;;  %vm4405_vm11 = vcmask 257152  }
  0x45   :  { %5834 = vmatprep.mubr.msk.f32.mxu0 %vm6511_vm0, %v6512_v1  ;;  %6198 = vmatpush3.bf16.msra.mxu0 %v6197_v34 }
  0x46   :  { %6199 = vmatprep.subr.bf16.mxu0 %v6510_v0 }
  0x48   :  { %5835 = vmatmul.mubr.f32.gmra.mrb[2].mxu0 %v165_v35 }
  0x49   :  { %5837 = vmatprep.mubr.msk.f32.mxu0 %vm6511_vm0, %v6512_v1 }
  0x4c   :  { %5838 = vmatmul.mubr.f32.gmra.mrb[4].mxu0 %v175_v37 }
  0x4d   :  { %5844 = vmatprep.mubr.msk.f32.mxu0 %vm6511_vm0, %v6512_v1 }
  0x50   :  { %5845 = vmatmul.mubr.f32.vlgmr.msra.gmra.mrb[0].mxu0 %v6616_v11 }
  0x51   :  { %6201 = vmatpush3.bf16.msra.mxu0 %v6200_v38  ;;  %5847 = vmatprep.mubr.msk.f32.mxu0 %vm6511_vm0, %v6512_v1 }
  0x52   :  { %6202 = vmatprep.subr.bf16.mxu0 %v6510_v0 }
  0x54   :  { %5848 = vmatmul.mubr.f32.gmra.mrb[2].mxu0 %v6618_v15 }
  0x55   :  { %5850 = vmatprep.mubr.msk.f32.mxu0 %vm6511_vm0, %v6512_v1 }
  0x58   :  { %5851 = vmatmul.mubr.f32.gmra.mrb[4].mxu0 %v6620_v16 }
  0x59   :  { %5857 = vmatprep.mubr.msk.f32.mxu0 %vm6511_vm0, %v6512_v1 }
  0x5c   :  { %5858 = vmatmul.mubr.f32.vlgmr.msra.gmra.mrb[0].mxu0 %v152_v19 }
  0x5d   :  { %6204 = vmatpush3.bf16.msra.mxu0 %v6194_v17  ;;  %5860 = vmatprep.mubr.msk.f32.mxu0 %vm6511_vm0, %v6512_v1 }
  0x5e   :  { %6205 = vmatprep.subr.bf16.mxu0 %v6510_v0 }
  0x60   :  { %5861 = vmatmul.mubr.f32.gmra.mrb[2].mxu0 %v162_v21  ;;  %v6738_v21 = vld [vmem:[#allocation7 + $0x10] sm:$0xff] }
  0x61   :  { %5863 = vmatprep.mubr.msk.f32.mxu0 %vm6511_vm0, %v6512_v1 }
  0x64   :  { %5864 = vmatmul.mubr.f32.gmra.mrb[4].mxu0 %v172_v22  ;;  %v6740_v22 = vld [vmem:[#allocation7] sm:$0xff] }
  0x65   :  { %5870 = vmatprep.mubr.msk.f32.mxu0 %vm6511_vm0, %v6512_v1 }
  0x68   :  { %5871 = vmatmul.mubr.f32.vlgmr.msra.gmra.mrb[0].mxu0 %v153_v23 }
  0x69   :  { %6207 = vmatpush3.bf16.msra.mxu0 %v6206_v39  ;;  %5873 = vmatprep.mubr.msk.f32.mxu0 %vm6511_vm0, %v6512_v1 }
  0x6a   :  { %6208 = vmatprep.subr.bf16.mxu0 %v6510_v0 }
  0x6c   :  { %5874 = vmatmul.mubr.f32.gmra.mrb[2].mxu0 %v163_v26 }
  0x6d   :  { %5876 = vmatprep.mubr.msk.f32.mxu0 %vm6511_vm0, %v6512_v1 }
  0x70   :  { %5877 = vmatmul.mubr.f32.gmra.mrb[4].mxu0 %v173_v29 }
  0x71   :  { %5883 = vmatprep.mubr.msk.f32.mxu0 %vm6511_vm0, %v6512_v1 }
  0x74   :  { %5884 = vmatmul.mubr.f32.vlgmr.msra.gmra.mrb[0].mxu0 %v6616_v11 }
  0x75   :  { %6210 = vmatpush3.bf16.msra.mxu0 %v6194_v17  ;;  %5886 = vmatprep.mubr.msk.f32.mxu0 %vm6511_vm0, %v6512_v1 }
  0x76   :  { %6229 = vmatprep.subr.bf16.mxu0 %v6510_v0 }
  0x78   :  { %5887 = vmatmul.mubr.f32.gmra.mrb[2].mxu0 %v6618_v15 }
  0x79   :  { %5889 = vmatprep.mubr.msk.f32.mxu0 %vm6511_vm0, %v6512_v1 }
  0x7c   :  { %5890 = vmatmul.mubr.f32.gmra.mrb[4].mxu0 %v6620_v16 }
  0x7d   :  { %5896 = vmatprep.mubr.msk.f32.mxu0 %vm6511_vm0, %v6512_v1 }
  0x80   :  { %5897 = vmatmul.mubr.f32.vlgmr.msra.gmra.mrb[0].mxu0 %v6616_v11 }
  0x81   :  { %5899 = vmatprep.mubr.msk.f32.mxu0 %vm6511_vm0, %v6512_v1 }
  0x84   :  { %5900 = vmatmul.mubr.f32.gmra.mrb[2].mxu0 %v6618_v15 }
  0x85   :  { %5902 = vmatprep.mubr.msk.f32.mxu0 %vm6511_vm0, %v6512_v1 }
  0x88   :  { %5903 = vmatmul.mubr.f32.gmra.mrb[4].mxu0 %v6620_v16 }
  0x89   :  { %6011 = vmatprep.mubr.msk.f32.mxu0 %vm6511_vm0, %v6512_v1 }
 0x153   :  { %v6684_v46 = vpop.f32.mrb[0].mxu0 }
 0x154   :  { %v778_v47 = vrot.slane %v6684_v46, 4  ;;  %745 = vxpose.xlu0.b32.start.end [1/1] (short) (narrow) %v6684_v46, 16  ;;  %v5898_v48 = vpop.f32.mrb[1].mxu0 }
 0x155   :  { %v6766_v48 = vld [vmem:[#allocation5 + $0x8] sm:$0xff] }
 0x156   :  { %v787_v50 = vsel %vm786_vm3, %v778_v47, 0 }
 0x157   :  { %v6692_v51 = vand.u32 4294901760, %v787_v50  ;;  %v6694_v52 = vpop.f32.mrb[2].mxu0 }
 0x158   :  { %v5901_v53 = vpop.f32.mrb[3].mxu0  ;;  %v6699_v54 = vrot.slane %v6694_v52, %v7419_v49  ;;  %v6713_v60 = vrot.slane %v6694_v52, %v7420_v55  ;;  %v6722_v2 = vrot.slane %v6694_v52, %v650_v63  ;;  %v6730_v4 = vrot.slane %v6694_v52, %v661_v3 }
 0x159   :  { %v877_v56 = vsub.f32 %v787_v50, %v6692_v51  ;;  %5905 = vmatprep.subr.mxu1 %v6692_v51  ;;  %v6768_v50 = vld [vmem:[#allocation5] sm:$0xff] }
 0x15a   :  { %5906 = vmatpush3.msra.mxu1 %v6692_v51  ;;  %697 = vbcast.lane.b32.xlu1 %v6699_v54, 256 }
 0x15b   :  { %v6706_v57 = vpop.f32.mrb[4].mxu0  ;;  %v6708_v58 = vand.u32 4294901760, %v877_v56 }
 0x15c   :  { %v5904_v59 = vpop.f32.mrb[5].mxu0 }
 0x15d   :  { %v879_v61 = vsub.f32 %v877_v56, %v6708_v58 }
 0x15e   :  { %690 = vbcast.lane.b32.xlu1 %v6713_v60, 264 }
 0x15f   :  { %v880_v62 = vand.u32 4294901760, %v879_v61 }
 0x161   :  { %5910 = vmatprep.subr.mxu1 %v880_v62 }
 0x162   :  { %701 = vbcast.lane.b32.xlu1 %v6699_v54, 264 }
 0x166   :  { %653 = vbcast.lane.b32.xlu1 %v6722_v2, 256 }
 0x16a   :  { %657 = vbcast.lane.b32.xlu1 %v6722_v2, 264 }
 0x16e   :  { %664 = vbcast.lane.b32.xlu1 %v6730_v4, 256 }
 0x172   :  { %668 = vbcast.lane.b32.xlu1 %v6730_v4, 264 }
 0x181   :  { %686 = vbcast.lane.b32.xlu0 %v6713_v60, 256 }
 0x1cc   :  { %v698_v19 = vpop.permute.xlu1 %697 }
 0x1cd   :  { %v705_v23 = vmul.f32 %v698_v19, %v6738_v21 }
 0x1cf   :  { %v708_v31 = vsel %vm674_vm5, %v705_v23, 0.0 }
 0x1d0   :  { %v691_v20 = vpop.permute.xlu1 %690 }
 0x1d1   :  { %v704_v32 = vmul.f32 %v691_v20, %v6745_v27  ;;  %v7417_v20 = vsub.s32 7, %v6676_v41 }
 0x1d3   :  { %v710_v35 = vsel %vm674_vm5, %v704_v32, 0.0  ;;  %v6791_v23 = vrot.slane %v6694_v52, %v7417_v20 }
 0x1d4   :  { %v761_v5 = vpop.trf.xlu0  ;;  %v702_v25 = vpop.permute.xlu1 %701 }
 0x1d5   :  { %v781_v6 = vsel %vm779_vm4, %v761_v5, 0  ;;  %v706_v29 = vmul.f32 %v702_v25, %v6743_v24  ;;  %v1348_v25 = vsub.s32 2, %v6676_v41 }
 0x1d6   :  { %v855_v7 = vand.u32 4294901760, %v781_v6 }
 0x1d7   :  { %v711_v34 = vsel %vm674_vm5, %v706_v29, 0.0 }
 0x1d8   :  { %v856_v8 = vsub.f32 %v781_v6, %v855_v7  ;;  %v762_v9 = vpop.trf.xlu0  ;;  %v712_v36 = vadd.f32 %v711_v34, %v710_v35  ;;  %v654_v37 = vpop.permute.xlu1 %653 }
 0x1d9   :  { %v784_v10 = vsel %vm779_vm4, %v762_v9, 0  ;;  %v670_v59 = vmul.f32 %v654_v37, %v6768_v50 }
 0x1da   :  { %v865_v11 = vand.u32 4294901760, %v784_v10  ;;  %v857_v12 = vand.u32 4294901760, %v856_v8 }
 0x1dc   :  { %v866_v13 = vsub.f32 %v784_v10, %v865_v11  ;;  %v858_v14 = vsub.f32 %v856_v8, %v857_v12  ;;  %v658_v38 = vpop.permute.xlu1 %657 }
 0x1de   :  { %v859_v15 = vand.u32 4294901760, %v858_v14  ;;  %v867_v16 = vand.u32 4294901760, %v866_v13 }
 0x1e0   :  { %5907 = vmatprep.mubr.f32.mxu1 %v859_v15  ;;  %v868_v17 = vsub.f32 %v866_v13, %v867_v16  ;;  %v665_v39 = vpop.permute.xlu1 %664 }
 0x1e1   :  { %v672_v53 = vmul.f32 %v665_v39, %v6764_v44 }
 0x1e2   :  { %v869_v18 = vand.u32 4294901760, %v868_v17 }
 0x1e4   :  { %5908 = vmatmul.mubr.f32.vlgmr.msra.gmra.mrb[0].mxu1 %v869_v18  ;;  %v669_v42 = vpop.permute.xlu1 %668  ;;  %v7418_v18 = vsub.s32 6, %v6676_v41 }
 0x1e5   :  { %5911 = vmatpush3.msra.mxu1 %v880_v62  ;;  %5912 = vmatprep.mubr.f32.mxu1 %v855_v7  ;;  %v676_v62 = vsel %vm674_vm5, %v672_v53, 0.0 }
 0x1e6   :  { %5915 = vmatprep.subr.mxu1 %v877_v56  ;;  %v6784_v19 = vrot.slane %v6694_v52, %v7418_v18 }
 0x1ec   :  { %5913 = vmatmul.mubr.f32.vlgmr.msra.gmra.mrb[0].mxu1 %v865_v11 }
 0x1ed   :  { %5916 = vmatpush3.msra.mxu1 %v877_v56  ;;  %5917 = vmatprep.mubr.f32.mxu1 %v856_v8  ;;  %v671_v56 = vmul.f32 %v658_v38, %v6766_v48 }
 0x1ee   :  { %5920 = vmatprep.subr.mxu1 %v6692_v51 }
 0x1ef   :  { %v678_v5 = vsel %vm674_vm5, %v671_v56, 0.0 }
 0x1f3   :  { %v687_v26 = vpop.permute.xlu0 %686 }
 0x1f4   :  { %v703_v28 = vmul.f32 %v687_v26, %v6740_v22  ;;  %5918 = vmatmul.mubr.f32.vlgmr.msra.gmra.mrb[0].mxu1 %v866_v13  ;;  %v6799_v26 = vrot.slane %v6694_v52, %v1348_v25 }
 0x1f5   :  { %5921 = vmatpush3.msra.mxu1 %v6692_v51  ;;  %5922 = vmatprep.mubr.f32.mxu1 %v857_v12 }
 0x1f6   :  { %5925 = vmatprep.subr.mxu1 %v6708_v58  ;;  %v707_v30 = vsel %vm674_vm5, %v703_v28, 0.0  ;;  %v1352_v28 = vsub.s32 3, %v6676_v41 }
 0x1f7   :  { %v709_v33 = vadd.f32 %v708_v31, %v707_v30 }
 0x1f8   :  { %v6807_v29 = vrot.slane %v6694_v52, %v1352_v28 }
 0x1f9   :  { %713 = vxpose.xlu1.b32.start [1/2] (short) (narrow) %v709_v33, 16 }
 0x1fc   :  { %5923 = vmatmul.mubr.f32.vlgmr.msra.gmra.mrb[0].mxu1 %v867_v16 }
 0x1fd   :  { %5926 = vmatpush3.msra.mxu1 %v6708_v58  ;;  %5927 = vmatprep.mubr.f32.mxu1 %v855_v7 }
 0x1fe   :  { %5930 = vmatprep.subr.mxu1 %v6692_v51  ;;  %714 = vxpose.xlu1.b32.end [2/2] (short) (narrow) %v712_v36, 16 }
 0x204   :  { %5928 = vmatmul.mubr.f32.vlgmr.msra.gmra.mrb[0].mxu1 %v865_v11 }
 0x205   :  { %5931 = vmatpush3.msra.mxu1 %v6692_v51  ;;  %5932 = vmatprep.mubr.f32.mxu1 %v855_v7  ;;  %v673_v51 = vmul.f32 %v669_v42, %v6762_v40  ;;  %v675_v7 = vsel %vm674_vm5, %v670_v59, 0.0 }
 0x206   :  { %6211 = vmatprep.subr.bf16.mxu1 %v6510_v0  ;;  %v677_v9 = vadd.f32 %v676_v62, %v675_v7 }
 0x207   :  { %v679_v61 = vsel %vm674_vm5, %v673_v51, 0.0 }
 0x208   :  { %v680_v6 = vadd.f32 %v679_v61, %v678_v5  ;;  %v2017_v61 = vrot.slane %v6684_v46, 2 }
 0x20c   :  { %5933 = vmatmul.mubr.f32.vlgmr.msra.gmra.mrb[0].mxu1 %v865_v11 }
 0x20d   :  { %5939 = vmatprep.mubr.msk.f32.mxu1 %vm6511_vm0, %v6512_v1 }
 0x27a   :  { %v729_v58 = vpop.trf.xlu1 }
 0x27e   :  { %v730_v10 = vpop.trf.xlu1 }
 0x2df   :  { %v5934_v8 = vpop.f32.mrb[0].mxu1 }
 0x2e0   :  { %v6283_v11 = vadd.f32 %v5934_v8, %v680_v6  ;;  %v1268_v12 = vpop.f32.mrb[1].mxu1  ;;  %v1446_v6 = vsel %vm674_vm5, %v6706_v57, 0 }
 0x2e1   :  { %v6284_v13 = vadd.f32 %v1268_v12, %v677_v9  ;;  %v6823_v8 = vand.u32 4294901760, %v1446_v6 }
 0x2e2   :  { %v1279_v14 = vadd.f32 %v6283_v11, %v730_v10 }
 0x2e3   :  { %v1278_v15 = vadd.f32 %v6284_v13, %v729_v58  ;;  %v1522_v13 = vsub.f32 %v1446_v6, %v6823_v8 }
 0x2e4   :  { %v1283_v16 = vsel %vm674_vm5, %v1279_v14, -inf }
 0x2e5   :  { %1284 = vmax.xlane.f32.xlu1 %v1283_v16  ;;  %v1280_v17 = vsel %vm674_vm5, %v1278_v15, -inf }
 0x2e6   :  { %1281 = vmax.xlane.f32.xlu0 %v1280_v17 }
 0x2f6   :  { %1958 = vbcast.lane.b32.xlu1 %v6784_v19, 256 }
 0x2fa   :  { %1969 = vbcast.lane.b32.xlu1 %v6791_v23, 256 }
 0x2fe   :  { %1973 = vbcast.lane.b32.xlu1 %v6791_v23, 264 }
 0x302   :  { %1926 = vbcast.lane.b32.xlu1 %v6799_v26, 256 }
 0x306   :  { %1930 = vbcast.lane.b32.xlu1 %v6799_v26, 264 }
 0x30a   :  { %1937 = vbcast.lane.b32.xlu1 %v6807_v29, 256 }
 0x30e   :  { %1941 = vbcast.lane.b32.xlu1 %v6807_v29, 264 }
 0x372   :  { %v1285_v30 = vpop.xlane.xlu1 %1284 }
 0x373   :  { %v1287_v31 = vsub.f32 %v1279_v14, %v1285_v30  ;;  %v1282_v32 = vpop.xlane.xlu0 %1281 }
 0x374   :  { %v1286_v33 = vsub.f32 %v1278_v15, %v1282_v32 }
 0x375   :  { %v1290_v34 = vmul.f32 1.442695, %v1287_v31  ;;  %v1523_v31 = vand.u32 4294901760, %v1522_v13 }
 0x376   :  { %v1288_v35 = vmul.f32 1.442695, %v1286_v33  ;;  %v1959_v36 = vpop.permute.xlu1 %1958 }
 0x377   :  { %v1975_v37 = vmul.f32 %v1959_v36, %v6740_v22  ;;  %v1524_v36 = vsub.f32 %v1522_v13, %v1523_v31 }
 0x378   :  { %6375 = vpow2.f32 %v1288_v35 }
 0x379   :  { %6377 = vpow2.f32 %v1290_v34  ;;  %v1979_v52 = vsel %vm674_vm5, %v1975_v37, 0.0 }
 0x37a   :  { %v1970_v38 = vpop.permute.xlu1 %1969 }
 0x37b   :  { %v1977_v39 = vmul.f32 %v1970_v38, %v6738_v21 }
 0x37d   :  { %v1980_v42 = vsel %vm674_vm5, %v1977_v39, 0.0 }
 0x37e   :  { %v1981_v51 = vadd.f32 %v1980_v42, %v1979_v52  ;;  %v1525_v52 = vand.u32 4294901760, %v1524_v36 }
 0x380   :  { %1985 = vxpose.xlu1.b32.start [1/2] (short) (narrow) %v1981_v51, 16 }
 0x382   :  { %v6376_v53 = vpop.eup %6375 }
 0x383   :  { %v1292_v56 = vsel %vm674_vm5, %v6376_v53, 0.0  ;;  %v6378_v58 = vpop.eup %6377 }
 0x384   :  { %1293 = vadd.xlane.f32.xlu0 %v1292_v56  ;;  %v1295_v59 = vsel %vm674_vm5, %v6378_v58, 0.0  ;;  %v2051_v56 = vrot.slane %v6684_v46, 6 }
 0x388   :  { %1296 = vadd.xlane.f32.xlu0 %v1295_v59 }
 0x3b5   :  { %2019 = vxpose.xlu0.b32.start.end [1/1] (short) (narrow) %v2017_v61, 16 }
 0x3e2   :  { %1962 = vbcast.lane.b32.xlu0 %v6784_v19, 264 }
 0x411   :  { %v1294_v62 = vpop.xlane.xlu0 %1293 }
 0x412   :  { %6379 = vrcp.f32 %v1294_v62  ;;  %v2058_v62 = vsel %vm786_vm3, %v2051_v56, 0 }
 0x415   :  { %v1297_v5 = vpop.xlane.xlu0 %1296 }
 0x416   :  { %6381 = vrcp.f32 %v1297_v5 }
 0x41c   :  { %v6380_v7 = vpop.eup %6379 }
 0x41d   :  { %v6825_v9 = vmul.f32 %v6380_v7, %v6376_v53 }
 0x41f   :  { %v1449_v10 = vsel %vm674_vm5, %v6825_v9, 0 }
 0x420   :  { %v6382_v11 = vpop.eup %6381  ;;  %v1455_v12 = vand.u32 4294901760, %v1449_v10 }
 0x421   :  { %v6830_v14 = vmul.f32 %v6382_v11, %v6378_v58 }
 0x422   :  { %v1533_v15 = vsub.f32 %v1449_v10, %v1455_v12  ;;  %v2061_v10 = vand.u32 4294901760, %v2058_v62 }
 0x423   :  { %v1452_v16 = vsel %vm674_vm5, %v6830_v14, 0 }
 0x424   :  { %v1458_v17 = vand.u32 4294901760, %v1452_v16  ;;  %v1534_v30 = vand.u32 4294901760, %v1533_v15 }
 0x426   :  { %v6212_v32 = vpack.c.bf16 %v1458_v17, %v1455_v12  ;;  %v1540_v33 = vsub.f32 %v1452_v16, %v1458_v17  ;;  %v1535_v34 = vsub.f32 %v1533_v15, %v1534_v30 }
 0x428   :  { %6213 = vmatpush3.bf16.xpose.msra.mxu1 %v6212_v32  ;;  %v1541_v35 = vand.u32 4294901760, %v1540_v33  ;;  %v1536_v38 = vand.u32 4294901760, %v1535_v34  ;;  %v6218_v51 = vpack.c.bf16 %v1540_v33, %v1533_v15 }
 0x429   :  { %6214 = vmatprep.subr.bf16.mxu1 %v6510_v0 }
 0x42a   :  { %v1542_v37 = vsub.f32 %v1540_v33, %v1541_v35  ;;  %v6224_v5 = vpack.c.bf16 %v1541_v35, %v1534_v30  ;;  %v1974_v30 = vpop.permute.xlu1 %1973 }
 0x42b   :  { %v1978_v34 = vmul.f32 %v1974_v30, %v6743_v24 }
 0x42c   :  { %v1543_v39 = vand.u32 4294901760, %v1542_v37 }
 0x42e   :  { %v6215_v42 = vpack.c.bf16 %v1543_v39, %v1536_v38 }
 0x42f   :  { %5940 = vmatmul.mubr.f32.vlgmr.msra.gmra.mrb[2].mxu1 %v1525_v52  ;;  %v1983_v52 = vsel %vm674_vm5, %v1978_v34, 0.0 }
 0x430   :  { %6216 = vmatpush3.bf16.xpose.msra.mxu1 %v6215_v42  ;;  %5946 = vmatprep.mubr.msk.f32.mxu1 %vm6511_vm0, %v6512_v1 }
 0x431   :  { %6217 = vmatprep.subr.bf16.mxu1 %v6510_v0 }
 0x435   :  { %v2035_v53 = vpop.trf.xlu0 }
 0x436   :  { %v2053_v58 = vsel %vm779_vm4, %v2035_v53, 0 }
 0x437   :  { %5947 = vmatmul.mubr.f32.vlgmr.msra.gmra.mrb[4].mxu1 %v6823_v8  ;;  %v2126_v6 = vand.u32 4294901760, %v2053_v58 }
 0x438   :  { %6219 = vmatpush3.bf16.xpose.msra.mxu1 %v6218_v51  ;;  %5953 = vmatprep.mubr.msk.f32.mxu1 %vm6511_vm0, %v6512_v1 }
 0x439   :  { %6220 = vmatprep.subr.bf16.mxu1 %v6510_v0  ;;  %v2036_v59 = vpop.trf.xlu0  ;;  %v2127_v12 = vsub.f32 %v2053_v58, %v2126_v6 }
 0x43a   :  { %v2056_v7 = vsel %vm779_vm4, %v2036_v59, 0 }
 0x43b   :  { %v2136_v11 = vand.u32 4294901760, %v2056_v7  ;;  %v2128_v16 = vand.u32 4294901760, %v2127_v12 }
 0x43d   :  { %v2137_v15 = vsub.f32 %v2056_v7, %v2136_v11  ;;  %v2129_v33 = vsub.f32 %v2127_v12, %v2128_v16 }
 0x43f   :  { %5954 = vmatmul.mubr.f32.vlgmr.msra.gmra.mrb[6].mxu1 %v1522_v13  ;;  %v2148_v13 = vsub.f32 %v2058_v62, %v2061_v10  ;;  %v2130_v39 = vand.u32 4294901760, %v2129_v33 }
 0x440   :  { %6222 = vmatpush3.bf16.xpose.msra.mxu1 %v6212_v32  ;;  %5960 = vmatprep.mubr.msk.f32.mxu1 %vm6511_vm0, %v6512_v1 }
 0x441   :  { %6223 = vmatprep.subr.bf16.mxu1 %v6510_v0  ;;  %v2149_v17 = vand.u32 4294901760, %v2148_v13 }
 0x443   :  { %v2150_v35 = vsub.f32 %v2148_v13, %v2149_v17 }
 0x447   :  { %5961 = vmatmul.mubr.f32.vlgmr.msra.gmra.mrb[8].mxu1 %v1523_v31  ;;  %v2138_v31 = vand.u32 4294901760, %v2137_v15 }
 0x448   :  { %6225 = vmatpush3.bf16.xpose.msra.mxu1 %v6224_v5  ;;  %5967 = vmatprep.mubr.msk.f32.mxu1 %vm6511_vm0, %v6512_v1 }
 0x449   :  { %6226 = vmatprep.subr.bf16.mxu1 %v6510_v0  ;;  %v2139_v37 = vsub.f32 %v2137_v15, %v2138_v31 }
 0x44b   :  { %v2140_v53 = vand.u32 4294901760, %v2139_v37 }
 0x44f   :  { %5968 = vmatmul.mubr.f32.vlgmr.msra.gmra.mrb[10].mxu1 %v6823_v8 }
 0x450   :  { %6228 = vmatpush3.bf16.xpose.msra.mxu1 %v6212_v32  ;;  %5974 = vmatprep.mubr.msk.f32.mxu1 %vm6511_vm0, %v6512_v1  ;;  %v2151_v32 = vand.u32 4294901760, %v2150_v35 }
 0x451   :  { %5977 = vmatprep.subr.mxu1 %v2061_v10 }
 0x454   :  { %v1963_v36 = vpop.permute.xlu0 %1962 }
 0x455   :  { %v1976_v38 = vmul.f32 %v1963_v36, %v6745_v27 }
 0x457   :  { %v1982_v42 = vsel %vm674_vm5, %v1976_v38, 0.0  ;;  %5975 = vmatmul.mubr.f32.vlgmr.msra.gmra.mrb[12].mxu1 %v6823_v8 }
 0x458   :  { %v1984_v51 = vadd.f32 %v1983_v52, %v1982_v42  ;;  %5978 = vmatpush3.msra.mxu1 %v2061_v10  ;;  %5979 = vmatprep.mubr.f32.mxu1 %v2130_v39 }
 0x459   :  { %5982 = vmatprep.subr.mxu1 %v2151_v32 }
 0x45a   :  { %1986 = vxpose.xlu1.b32.end [2/2] (short) (narrow) %v1984_v51, 16 }
 0x45b   :  { %5980 = vmatmul.mubr.f32.vlgmr.msra.gmra.mrb[14].mxu1 %v2140_v53 }
 0x45c   :  { %5983 = vmatpush3.msra.mxu1 %v2151_v32  ;;  %5984 = vmatprep.mubr.f32.mxu1 %v2126_v6 }
 0x45d   :  { %5987 = vmatprep.subr.mxu1 %v2148_v13 }
 0x463   :  { %5985 = vmatmul.mubr.f32.vlgmr.msra.gmra.mrb[14].mxu1 %v2136_v11 }
 0x464   :  { %5988 = vmatpush3.msra.mxu1 %v2148_v13  ;;  %5989 = vmatprep.mubr.f32.mxu1 %v2127_v12 }
 0x465   :  { %5992 = vmatprep.subr.mxu1 %v2061_v10 }
 0x46b   :  { %5990 = vmatmul.mubr.f32.vlgmr.msra.gmra.mrb[14].mxu1 %v2137_v15 }
 0x46c   :  { %5993 = vmatpush3.msra.mxu1 %v2061_v10  ;;  %5994 = vmatprep.mubr.f32.mxu1 %v2128_v16  ;;  %v1927_v16 = vpop.permute.xlu1 %1926 }
 0x46d   :  { %5997 = vmatprep.subr.mxu1 %v2149_v17  ;;  %v1943_v37 = vmul.f32 %v1927_v16, %v6768_v50 }
 0x46f   :  { %v1947_v32 = vsel %vm674_vm5, %v1943_v37, 0.0 }
 0x473   :  { %5995 = vmatmul.mubr.f32.vlgmr.msra.gmra.mrb[14].mxu1 %v2138_v31 }
 0x474   :  { %5998 = vmatpush3.msra.mxu1 %v2149_v17  ;;  %5999 = vmatprep.mubr.f32.mxu1 %v2126_v6  ;;  %v1931_v17 = vpop.permute.xlu1 %1930 }
 0x475   :  { %6002 = vmatprep.subr.mxu1 %v2061_v10  ;;  %v1944_v35 = vmul.f32 %v1931_v17, %v6766_v48 }
 0x477   :  { %v1950_v52 = vsel %vm674_vm5, %v1944_v35, 0.0 }
 0x478   :  { %v1938_v30 = vpop.permute.xlu1 %1937 }
 0x479   :  { %v1945_v34 = vmul.f32 %v1938_v30, %v6764_v44 }
 0x47b   :  { %6000 = vmatmul.mubr.f32.vlgmr.msra.gmra.mrb[14].mxu1 %v2136_v11  ;;  %v1948_v39 = vsel %vm674_vm5, %v1945_v34, 0.0 }
 0x47c   :  { %6003 = vmatpush3.msra.mxu1 %v2061_v10  ;;  %6004 = vmatprep.mubr.f32.mxu1 %v2126_v6  ;;  %v1942_v31 = vpop.permute.xlu1 %1941  ;;  %v1949_v53 = vadd.f32 %v1948_v39, %v1947_v32 }
 0x47d   :  { %6241 = vmatprep.subr.bf16.mxu1 %v6510_v0  ;;  %v1946_v33 = vmul.f32 %v1942_v31, %v6762_v40 }
 0x47f   :  { %v1951_v38 = vsel %vm674_vm5, %v1946_v33, 0.0 }
 0x480   :  { %v1952_v42 = vadd.f32 %v1951_v38, %v1950_v52 }
 0x483   :  { %6005 = vmatmul.mubr.f32.vlgmr.msra.gmra.mrb[14].mxu1 %v2136_v11 }
 0x484   :  { %6039 = vmatprep.mubr.msk.f32.mxu1 %vm6511_vm0, %v6512_v1 }
 0x4d6   :  { %v2001_v36 = vpop.trf.xlu1 }
 0x502   :  { %v6865_v8 = vpop.f32.mrb[2].mxu1 }
 0x503   :  { %v5941_v58 = vpop.f32.mrb[3].mxu1 }
 0x504   :  { %v2002_v58 = vpop.trf.xlu1 }
 0x50a   :  { %v6867_v59 = vpop.f32.mrb[4].mxu1 }
 0x50b   :  { %v5948_v62 = vpop.f32.mrb[5].mxu1 }
 0x512   :  { %v6869_v5 = vpop.f32.mrb[6].mxu1 }
 0x513   :  { %v5955_v7 = vpop.f32.mrb[7].mxu1 }
 0x51a   :  { %v6871_v12 = vpop.f32.mrb[8].mxu1 }
 0x51b   :  { %v5962_v13 = vpop.f32.mrb[9].mxu1 }
 0x522   :  { %v6873_v10 = vpop.f32.mrb[10].mxu1 }
 0x523   :  { %v5969_v6 = vpop.f32.mrb[11].mxu1 }
 0x52a   :  { %v6875_v15 = vpop.f32.mrb[12].mxu1 }
 0x52b   :  { %v5976_v11 = vpop.f32.mrb[13].mxu1 }
 0x556   :  { %v6006_v51 = vpop.f32.mrb[14].mxu1 }
 0x557   :  { %v6285_v62 = vadd.f32 %v6006_v51, %v1952_v42  ;;  %v2539_v7 = vpop.f32.mrb[15].mxu1  ;;  %v2633_v51 = vrot.slane %v6706_v57, 4 }
 0x558   :  { %v6286_v13 = vadd.f32 %v2539_v7, %v1949_v53 }
 0x559   :  { %v2550_v6 = vadd.f32 %v6285_v62, %v2002_v58 }
 0x55a   :  { %v2549_v11 = vadd.f32 %v6286_v13, %v2001_v36 }
 0x55b   :  { %v2554_v17 = vsel %vm674_vm5, %v2550_v6, -inf }
 0x55c   :  { %2555 = vmax.xlane.f32.xlu1 %v2554_v17  ;;  %v2551_v16 = vsel %vm674_vm5, %v2549_v11, -inf }
 0x55d   :  { %2552 = vmax.xlane.f32.xlu0 %v2551_v16 }
 0x573   :  { %3261 = vrot.lane.b32.xlu0 %v6684_v46, %s6513_s1 }
 0x5e9   :  { %v2556_v30 = vpop.xlane.xlu1 %2555 }
 0x5ea   :  { %v2558_v31 = vsub.f32 %v2550_v6, %v2556_v30  ;;  %v2553_v33 = vpop.xlane.xlu0 %2552 }
 0x5eb   :  { %v2557_v34 = vsub.f32 %v2549_v11, %v2553_v33 }
 0x5ec   :  { %v2561_v35 = vmul.f32 1.442695, %v2558_v31 }
 0x5ed   :  { %v2559_v37 = vmul.f32 1.442695, %v2557_v34 }
 0x5ee   :  { %6383 = vpow2.f32 %v2561_v35  ;;  %v3262_v42 = vpop.permute.xlu0 %3261 }
 0x5ef   :  { %6385 = vpow2.f32 %v2559_v37 }
 0x5f8   :  { %v6384_v38 = vpop.eup %6383 }
 0x5f9   :  { %v6386_v36 = vpop.eup %6385  ;;  %v2566_v39 = vsel %vm674_vm5, %v6384_v38, 0.0 }
 0x5fa   :  { %2567 = vadd.xlane.f32.xlu1 %v2566_v39  ;;  %v2563_v52 = vsel %vm674_vm5, %v6386_v36, 0.0 }
 0x5fb   :  { %2564 = vadd.xlane.f32.xlu0 %v2563_v52 }
 0x60b   :  { %3296 = vrot.lane.b32.xlu1 %v778_v47, %s6513_s1 }
 0x611   :  { %3205 = vbcast.lane.b32.xlu0 %v6713_v60, 272 }
 0x615   :  { %3213 = vbcast.lane.b32.xlu0 %v6699_v54, 272 }
 0x619   :  { %3209 = vbcast.lane.b32.xlu0 %v6713_v60, 280 }
 0x61d   :  { %3217 = vbcast.lane.b32.xlu0 %v6699_v54, 280  ;;  %v2706_v54 = vsel %vm674_vm5, %v2633_v51, 0 }
 0x61e   :  { %v6907_v58 = vand.u32 4294901760, %v2706_v54 }
 0x620   :  { %v2782_v30 = vsub.f32 %v2706_v54, %v6907_v58 }
 0x621   :  { %3179 = vbcast.lane.b32.xlu0 %v6722_v2, 272 }
 0x625   :  { %3187 = vbcast.lane.b32.xlu0 %v6730_v4, 272 }
 0x629   :  { %3191 = vbcast.lane.b32.xlu0 %v6730_v4, 280 }
 0x634   :  { %3264 = vxpose.xlu1.b32.start.end [1/1] (short) (narrow) %v3262_v42, 16 }
 0x656   :  { %3183 = vbcast.lane.b32.xlu1 %v6722_v2, 280 }
 0x687   :  { %v2568_v32 = vpop.xlane.xlu1 %2567 }
 0x688   :  { %6387 = vrcp.f32 %v2568_v32  ;;  %v2565_v47 = vpop.xlane.xlu0 %2564  ;;  %v2783_v32 = vand.u32 4294901760, %v2782_v30 }
 0x689   :  { %6389 = vrcp.f32 %v2565_v47 }
 0x68b   :  { %v3297_v4 = vpop.permute.xlu1 %3296 }
 0x68c   :  { %v3206_v53 = vpop.permute.xlu0 %3205  ;;  %v3304_v11 = vsel %vm786_vm3, %v3297_v4, 0 }
 0x68d   :  { %v3219_v60 = vmul.f32 %v3206_v53, %v6740_v22  ;;  %v6920_v37 = vand.u32 4294901760, %v3304_v11 }
 0x68f   :  { %v3223_v17 = vsel %vm674_vm5, %v3219_v60, 0.0  ;;  %v6927_v4 = vsub.f32 %v3304_v11, %v6920_v37 }
 0x690   :  { %v3214_v62 = vpop.permute.xlu0 %3213 }
 0x691   :  { %v3221_v7 = vmul.f32 %v3214_v62, %v6738_v21 }
 0x692   :  { %v6388_v2 = vpop.eup %6387 }
 0x693   :  { %v6390_v13 = vpop.eup %6389  ;;  %v6910_v6 = vmul.f32 %v6388_v2, %v6384_v38  ;;  %v3224_v16 = vsel %vm674_vm5, %v3221_v7, 0.0 }
 0x694   :  { %v6916_v31 = vmul.f32 %v6390_v13, %v6386_v36  ;;  %v3210_v33 = vpop.permute.xlu0 %3209  ;;  %v3225_v34 = vadd.f32 %v3224_v16, %v3223_v17  ;;  %v2784_v17 = vsub.f32 %v2782_v30, %v2783_v32 }
 0x695   :  { %v2712_v35 = vsel %vm674_vm5, %v6910_v6, 0  ;;  %v3220_v52 = vmul.f32 %v3210_v33, %v6745_v27 }
 0x696   :  { %3229 = vxpose.xlu0.b32.start [1/2] (short) (narrow) %v3225_v34, 16  ;;  %v2709_v38 = vsel %vm674_vm5, %v6916_v31, 0  ;;  %v2718_v39 = vand.u32 4294901760, %v2712_v35 }
 0x697   :  { %v2715_v42 = vand.u32 4294901760, %v2709_v38  ;;  %v3226_v7 = vsel %vm674_vm5, %v3220_v52, 0.0 }
 0x698   :  { %v3218_v47 = vpop.permute.xlu0 %3217  ;;  %v2800_v53 = vsub.f32 %v2712_v35, %v2718_v39 }
 0x699   :  { %v3222_v36 = vmul.f32 %v3218_v47, %v6743_v24  ;;  %v6230_v54 = vpack.c.bf16 %v2718_v39, %v2715_v42  ;;  %v2793_v60 = vsub.f32 %v2709_v38, %v2715_v42  ;;  %v3395_v38 = vand.u32 4294901760, %v6927_v4 }
 0x69a   :  { %v2801_v62 = vand.u32 4294901760, %v2800_v53  ;;  %v2785_v42 = vand.u32 4294901760, %v2784_v17 }
 0x69b   :  { %v3227_v2 = vsel %vm674_vm5, %v3222_v36, 0.0  ;;  %6231 = vmatpush3.bf16.xpose.msra.mxu0 %v6230_v54  ;;  %v2794_v13 = vand.u32 4294901760, %v2793_v60  ;;  %v3396_v47 = vsub.f32 %v6927_v4, %v3395_v38 }
 0x69c   :  { %v3228_v16 = vadd.f32 %v3227_v2, %v3226_v7  ;;  %6232 = vmatprep.subr.bf16.mxu0 %v6510_v0  ;;  %v2802_v33 = vsub.f32 %v2800_v53, %v2801_v62 }
 0x69d   :  { %v6242_v34 = vpack.c.bf16 %v2801_v62, %v2794_v13  ;;  %v2795_v35 = vsub.f32 %v2793_v60, %v2794_v13  ;;  %v3397_v36 = vand.u32 4294901760, %v3396_v47  ;;  %v6236_v62 = vpack.c.bf16 %v2800_v53, %v2793_v60 }
 0x69e   :  { %3230 = vxpose.xlu0.b32.end [2/2] (short) (narrow) %v3228_v16, 16  ;;  %v2803_v39 = vand.u32 4294901760, %v2802_v33 }
 0x69f   :  { %6243 = vmatpush3.bf16.xpose.msra.mxu1 %v6242_v34  ;;  %v2796_v11 = vand.u32 4294901760, %v2795_v35 }
 0x6a0   :  { %6049 = vmatprep.subr.mxu1 %v6920_v37 }
 0x6a1   :  { %v6233_v52 = vpack.c.bf16 %v2803_v39, %v2796_v11 }
 0x6a2   :  { %6012 = vmatmul.mubr.f32.vlgmr.msra.gmra.mrb[6].mxu0 %v2785_v42 }
 0x6a3   :  { %6234 = vmatpush3.bf16.xpose.msra.mxu0 %v6233_v52  ;;  %6018 = vmatprep.mubr.msk.f32.mxu0 %vm6511_vm0, %v6512_v1 }
 0x6a4   :  { %6235 = vmatprep.subr.bf16.mxu0 %v6510_v0 }
 0x6a6   :  { %6040 = vmatmul.mubr.f32.vlgmr.msra.gmra.mrb[16].mxu1 %v6907_v58 }
 0x6a7   :  { %6050 = vmatpush3.msra.mxu1 %v6920_v37 }
 0x6a8   :  { %6054 = vmatprep.subr.mxu1 %v3397_v36 }
 0x6aa   :  { %6019 = vmatmul.mubr.f32.vlgmr.msra.gmra.mrb[8].mxu0 %v6907_v58 }
 0x6ab   :  { %6237 = vmatpush3.bf16.xpose.msra.mxu0 %v6236_v62  ;;  %6025 = vmatprep.mubr.msk.f32.mxu0 %vm6511_vm0, %v6512_v1 }
 0x6ac   :  { %6238 = vmatprep.subr.bf16.mxu0 %v6510_v0 }
 0x6b2   :  { %6026 = vmatmul.mubr.f32.vlgmr.msra.gmra.mrb[10].mxu0 %v2782_v30 }
 0x6b3   :  { %6240 = vmatpush3.bf16.xpose.msra.mxu0 %v6230_v54  ;;  %6032 = vmatprep.mubr.msk.f32.mxu0 %vm6511_vm0, %v6512_v1 }
 0x6b4   :  { %v3280_v7 = vpop.trf.xlu1  ;;  %6244 = vmatprep.subr.bf16.mxu0 %v6510_v0 }
 0x6b5   :  { %v3299_v2 = vsel %vm779_vm4, %v3280_v7, 0 }
 0x6b6   :  { %v3372_v13 = vand.u32 4294901760, %v3299_v2 }
 0x6b8   :  { %v3373_v53 = vsub.f32 %v3299_v2, %v3372_v13  ;;  %v3281_v60 = vpop.trf.xlu1 }
 0x6b9   :  { %v3302_v17 = vsel %vm779_vm4, %v3281_v60, 0 }
 0x6ba   :  { %v3382_v16 = vand.u32 4294901760, %v3302_v17  ;;  %6033 = vmatmul.mubr.f32.vlgmr.msra.gmra.mrb[12].mxu0 %v2783_v32  ;;  %v3374_v33 = vand.u32 4294901760, %v3373_v53 }
 0x6bb   :  { %6246 = vmatpush3.bf16.xpose.msra.mxu0 %v6230_v54  ;;  %6046 = vmatprep.mubr.msk.f32.mxu0 %vm6511_vm0, %v6512_v1 }
 0x6bc   :  { %v3383_v30 = vsub.f32 %v3302_v17, %v3382_v16  ;;  %v3375_v34 = vsub.f32 %v3373_v53, %v3374_v33  ;;  %6247 = vmatprep.subr.bf16.mxu0 %v6510_v0 }
 0x6be   :  { %v3384_v35 = vand.u32 4294901760, %v3383_v30  ;;  %v3376_v39 = vand.u32 4294901760, %v3375_v34 }
 0x6c0   :  { %v3385_v11 = vsub.f32 %v3383_v30, %v3384_v35  ;;  %6051 = vmatprep.mubr.f32.mxu1 %v3376_v39 }
 0x6c2   :  { %v3386_v42 = vand.u32 4294901760, %v3385_v11  ;;  %6047 = vmatmul.mubr.f32.vlgmr.msra.gmra.mrb[14].mxu0 %v6907_v58 }
 0x6c3   :  { %6083 = vmatprep.mubr.msk.f32.mxu0 %vm6511_vm0, %v6512_v1 }
 0x6c4   :  { %6052 = vmatmul.mubr.f32.vlgmr.msra.gmra.mrb[18].mxu1 %v3386_v42 }
 0x6c5   :  { %6055 = vmatpush3.msra.mxu1 %v3397_v36  ;;  %6056 = vmatprep.mubr.f32.mxu1 %v3372_v13 }
 0x6c6   :  { %6059 = vmatprep.subr.mxu1 %v6927_v4 }
 0x6c8   :  { %v3184_v60 = vpop.permute.xlu1 %3183 }
 0x6cc   :  { %6057 = vmatmul.mubr.f32.vlgmr.msra.gmra.mrb[18].mxu1 %v3382_v16 }
 0x6cd   :  { %6060 = vmatpush3.msra.mxu1 %v6927_v4  ;;  %6061 = vmatprep.mubr.f32.mxu1 %v3373_v53 }
 0x6ce   :  { %6064 = vmatprep.subr.mxu1 %v6920_v37 }
 0x6d4   :  { %6062 = vmatmul.mubr.f32.vlgmr.msra.gmra.mrb[18].mxu1 %v3383_v30 }
 0x6d5   :  { %6065 = vmatpush3.msra.mxu1 %v6920_v37  ;;  %6066 = vmatprep.mubr.f32.mxu1 %v3374_v33 }
 0x6d6   :  { %6069 = vmatprep.subr.mxu1 %v3395_v38 }
 0x6dc   :  { %6067 = vmatmul.mubr.f32.vlgmr.msra.gmra.mrb[18].mxu1 %v3384_v35 }
 0x6dd   :  { %6070 = vmatpush3.msra.mxu1 %v3395_v38  ;;  %6071 = vmatprep.mubr.f32.mxu1 %v3372_v13 }
 0x6de   :  { %6074 = vmatprep.subr.mxu1 %v6920_v37 }
 0x6e4   :  { %6072 = vmatmul.mubr.f32.vlgmr.msra.gmra.mrb[18].mxu1 %v3382_v16 }
 0x6e5   :  { %6075 = vmatpush3.msra.mxu1 %v6920_v37  ;;  %6076 = vmatprep.mubr.f32.mxu1 %v3372_v13  ;;  %v3180_v13 = vpop.permute.xlu0 %3179 }
 0x6e6   :  { %6256 = vmatprep.subr.bf16.mxu1 %v6510_v0  ;;  %v3193_v35 = vmul.f32 %v3180_v13, %v6768_v50 }
 0x6e9   :  { %v3188_v53 = vpop.permute.xlu0 %3187 }
 0x6ea   :  { %v3195_v33 = vmul.f32 %v3188_v53, %v6764_v44 }
 0x6ec   :  { %6077 = vmatmul.mubr.f32.vlgmr.msra.gmra.mrb[18].mxu1 %v3382_v16  ;;  %v3194_v16 = vmul.f32 %v3184_v60, %v6766_v48  ;;  %v3198_v11 = vsel %vm674_vm5, %v3195_v33, 0.0 }
 0x6ed   :  { %6104 = vmatprep.mubr.msk.f32.mxu1 %vm6511_vm0, %v6512_v1  ;;  %v3192_v17 = vpop.permute.xlu0 %3191 }
 0x6ee   :  { %v3196_v30 = vmul.f32 %v3192_v17, %v6762_v40  ;;  %v3200_v39 = vsel %vm674_vm5, %v3194_v16, 0.0 }
 0x6f0   :  { %v3201_v42 = vsel %vm674_vm5, %v3196_v30, 0.0 }
 0x71a   :  { %v3245_v34 = vpop.trf.xlu0 }
 0x775   :  { %v6964_v58 = vpop.f32.mrb[6].mxu0 }
 0x776   :  { %v6013_v32 = vpop.f32.mrb[7].mxu0 }
 0x777   :  { %v3202_v32 = vadd.f32 %v3201_v42, %v3200_v39 }
 0x779   :  { %v6966_v54 = vpop.f32.mrb[16].mxu1 }
 0x77a   :  { %v6041_v4 = vpop.f32.mrb[17].mxu1 }
 0x77b   :  { %v3197_v4 = vsel %vm674_vm5, %v3193_v35, 0.0 }
 0x77d   :  { %v6968_v38 = vpop.f32.mrb[8].mxu0 }
 0x77e   :  { %v6020_v52 = vpop.f32.mrb[9].mxu0 }
 0x785   :  { %v6970_v47 = vpop.f32.mrb[10].mxu0 }
 0x786   :  { %v6027_v36 = vpop.f32.mrb[11].mxu0 }
 0x787   :  { %v3199_v36 = vadd.f32 %v3198_v11, %v3197_v4 }
 0x78d   :  { %v6972_v37 = vpop.f32.mrb[12].mxu0 }
 0x78e   :  { %v6034_v62 = vpop.f32.mrb[13].mxu0 }
 0x78f   :  { %v3246_v62 = vpop.trf.xlu0 }
 0x795   :  { %v6974_v7 = vpop.f32.mrb[14].mxu0 }
 0x796   :  { %v6048_v2 = vpop.f32.mrb[15].mxu0 }
 0x7bf   :  { %v6078_v52 = vpop.f32.mrb[18].mxu1 }
 0x7c0   :  { %v6287_v48 = vadd.f32 %v6078_v52, %v3202_v32  ;;  %v3785_v2 = vpop.f32.mrb[19].mxu1 }
 0x7c1   :  { %v6288_v44 = vadd.f32 %v3785_v2, %v3199_v36 }
 0x7c2   :  { %v3796_v53 = vadd.f32 %v6287_v48, %v3246_v62 }
 0x7c3   :  { %v3795_v40 = vadd.f32 %v6288_v44, %v3245_v34 }
 0x7c4   :  { %v3800_v60 = vsel %vm674_vm5, %v3796_v53, -inf }
 0x7c5   :  { %3801 = vmax.xlane.f32.xlu0 %v3800_v60  ;;  %v3797_v50 = vsel %vm674_vm5, %v3795_v40, -inf }
 0x7c6   :  { %3798 = vmax.xlane.f32.xlu1 %v3797_v50 }
 0x7db   :  { %3859 = vrot.lane.b32.xlu0 %v6706_v57, %s6513_s1 }
 0x7df   :  { %4435 = vbcast.lane.b32.xlu0 %v6784_v19, 272 }
 0x7e3   :  { %4443 = vbcast.lane.b32.xlu0 %v6791_v23, 272 }
 0x7e7   :  { %4439 = vbcast.lane.b32.xlu0 %v6784_v19, 280 }
 0x7eb   :  { %4447 = vbcast.lane.b32.xlu0 %v6791_v23, 280 }
 0x7ef   :  { %4409 = vbcast.lane.b32.xlu0 %v6799_v26, 272 }
 0x7f3   :  { %4413 = vbcast.lane.b32.xlu0 %v6799_v26, 280 }
 0x7f7   :  { %4417 = vbcast.lane.b32.xlu0 %v6807_v29, 272 }
 0x7fb   :  { %4421 = vbcast.lane.b32.xlu0 %v6807_v29, 280 }
 0x852   :  { %v3802_v13 = vpop.xlane.xlu0 %3801 }
 0x853   :  { %v3804_v17 = vsub.f32 %v3796_v53, %v3802_v13  ;;  %v3799_v16 = vpop.xlane.xlu1 %3798 }
 0x854   :  { %v3803_v33 = vsub.f32 %v3795_v40, %v3799_v16 }
 0x855   :  { %v3807_v30 = vmul.f32 1.442695, %v3804_v17 }
 0x856   :  { %v3805_v34 = vmul.f32 1.442695, %v3803_v33  ;;  %v3860_v26 = vpop.permute.xlu0 %3859 }
 0x857   :  { %6391 = vpow2.f32 %v3807_v30 }
 0x858   :  { %6393 = vpow2.f32 %v3805_v34 }
 0x85a   :  { %v4436_v29 = vpop.permute.xlu0 %4435 }
 0x85b   :  { %v4449_v62 = vmul.f32 %v4436_v29, %v6740_v22 }
 0x85d   :  { %v4453_v53 = vsel %vm674_vm5, %v4449_v62, 0.0 }
 0x85e   :  { %v4444_v11 = vpop.permute.xlu0 %4443 }
 0x85f   :  { %v4451_v52 = vmul.f32 %v4444_v11, %v6738_v21 }
 0x861   :  { %v6392_v35 = vpop.eup %6391  ;;  %v4454_v46 = vsel %vm674_vm5, %v4451_v52, 0.0 }
 0x862   :  { %v3812_v19 = vsel %vm674_vm5, %v6392_v35, 0.0  ;;  %v6394_v23 = vpop.eup %6393  ;;  %v4440_v42 = vpop.permute.xlu0 %4439  ;;  %v4455_v21 = vadd.f32 %v4454_v46, %v4453_v53 }
 0x863   :  { %3813 = vadd.xlane.f32.xlu1 %v3812_v19  ;;  %v3809_v39 = vsel %vm674_vm5, %v6394_v23, 0.0  ;;  %v4450_v44 = vmul.f32 %v4440_v42, %v6745_v27 }
 0x866   :  { %v4448_v36 = vpop.permute.xlu0 %4447 }
 0x867   :  { %3810 = vadd.xlane.f32.xlu1 %v3809_v39  ;;  %v4452_v2 = vmul.f32 %v4448_v36, %v6743_v24  ;;  %v4456_v24 = vsel %vm674_vm5, %v4450_v44, 0.0 }
 0x869   :  { %v4457_v50 = vsel %vm674_vm5, %v4452_v2, 0.0 }
 0x86a   :  { %v4458_v33 = vadd.f32 %v4457_v50, %v4456_v24 }
 0x878   :  { %4491 = vrot.lane.b32.xlu1 %v2017_v61, %s6513_s1  ;;  %v3933_v61 = vsel %vm674_vm5, %v3860_v26, 0 }
 0x879   :  { %v4008_v40 = vand.u32 4294901760, %v3933_v61 }
 0x87b   :  { %v4009_v16 = vsub.f32 %v3933_v61, %v4008_v40 }
 0x87c   :  { %4526 = vrot.lane.b32.xlu1 %v2051_v56, %s6513_s1 }
 0x87d   :  { %v4010_v39 = vand.u32 4294901760, %v4009_v16 }
 0x8f0   :  { %v3814_v32 = vpop.xlane.xlu1 %3813 }
 0x8f1   :  { %6395 = vrcp.f32 %v3814_v32  ;;  %v4011_v32 = vsub.f32 %v4009_v16, %v4010_v39 }
 0x8f4   :  { %v3811_v4 = vpop.xlane.xlu1 %3810 }
 0x8f5   :  { %6397 = vrcp.f32 %v3811_v4 }
 0x8f8   :  { %v4492_v48 = vpop.permute.xlu1 %4491 }
 0x8f9   :  { %4494 = vxpose.xlu1.b32.start.end [1/1] (short) (narrow) %v4492_v48, 16  ;;  %v4012_v48 = vand.u32 4294901760, %v4011_v32 }
 0x8fb   :  { %v6396_v56 = vpop.eup %6395 }
 0x8fc   :  { %v7011_v60 = vmul.f32 %v6396_v56, %v6392_v35  ;;  %v4527_v4 = vpop.permute.xlu1 %4526 }
 0x8fd   :  { %v4534_v52 = vsel %vm786_vm3, %v4527_v4, 0 }
 0x8fe   :  { %4459 = vxpose.xlu1.b32.start [1/2] (short) (narrow) %v4455_v21, 16  ;;  %v3939_v22 = vsel %vm674_vm5, %v7011_v60, 0  ;;  %v4537_v2 = vand.u32 4294901760, %v4534_v52 }
 0x8ff   :  { %v6398_v13 = vpop.eup %6397  ;;  %v3945_v17 = vand.u32 4294901760, %v3939_v22 }
 0x900   :  { %v7017_v30 = vmul.f32 %v6398_v13, %v6394_v23  ;;  %v4624_v46 = vsub.f32 %v4534_v52, %v4537_v2 }
 0x901   :  { %v4027_v27 = vsub.f32 %v3939_v22, %v3945_v17 }
 0x902   :  { %4460 = vxpose.xlu1.b32.end [2/2] (short) (narrow) %v4458_v33, 16  ;;  %v3936_v34 = vsel %vm674_vm5, %v7017_v30, 0  ;;  %v4625_v44 = vand.u32 4294901760, %v4624_v46 }
 0x903   :  { %v3942_v35 = vand.u32 4294901760, %v3936_v34  ;;  %v4028_v19 = vand.u32 4294901760, %v4027_v27 }
 0x904   :  { %v4626_v53 = vsub.f32 %v4624_v46, %v4625_v44 }
 0x905   :  { %v6248_v26 = vpack.c.bf16 %v3945_v17, %v3942_v35  ;;  %v4020_v29 = vsub.f32 %v3936_v34, %v3942_v35  ;;  %v4029_v42 = vsub.f32 %v4027_v27, %v4028_v19 }
 0x906   :  { %v4627_v50 = vand.u32 4294901760, %v4626_v53 }
 0x907   :  { %6249 = vmatpush3.bf16.xpose.msra.mxu0 %v6248_v26  ;;  %6258 = vmatpush3.bf16.xpose.msra.mxu1 %v6248_v26  ;;  %v4021_v11 = vand.u32 4294901760, %v4020_v29  ;;  %v4030_v62 = vand.u32 4294901760, %v4029_v42  ;;  %v6254_v56 = vpack.c.bf16 %v4027_v27, %v4020_v29 }
 0x908   :  { %6250 = vmatprep.subr.bf16.mxu0 %v6510_v0  ;;  %6262 = vmatprep.subr.bf16.mxu1 %v6510_v0 }
 0x909   :  { %v4022_v23 = vsub.f32 %v4020_v29, %v4021_v11  ;;  %v6260_v21 = vpack.c.bf16 %v4028_v19, %v4021_v11 }
 0x90b   :  { %v4023_v36 = vand.u32 4294901760, %v4022_v23 }
 0x90d   :  { %v6251_v61 = vpack.c.bf16 %v4030_v62, %v4023_v36 }
 0x90e   :  { %6084 = vmatmul.mubr.f32.vlgmr.msra.gmra.mrb[16].mxu0 %v4012_v48  ;;  %6105 = vmatmul.mubr.f32.vlgmr.msra.gmra.mrb[20].mxu1 %v4010_v39 }
 0x90f   :  { %6252 = vmatpush3.bf16.xpose.msra.mxu0 %v6251_v61  ;;  %6264 = vmatpush3.bf16.xpose.msra.mxu1 %v6248_v26 }
 0x910   :  { %6121 = vmatprep.subr.mxu1 %v4537_v2  ;;  %6090 = vmatprep.mubr.msk.f32.mxu0 %vm6511_vm0, %v6512_v1 }
 0x911   :  { %6118 = vmatprep.mubr.msk.f32.mxu1 %vm6511_vm0, %v6512_v1  ;;  %6253 = vmatprep.subr.bf16.mxu0 %v6510_v0 }
 0x916   :  { %6091 = vmatmul.mubr.f32.vlgmr.msra.gmra.mrb[18].mxu0 %v4008_v40  ;;  %6119 = vmatmul.mubr.f32.vlgmr.msra.gmra.mrb[22].mxu1 %v4008_v40 }
 0x917   :  { %6255 = vmatpush3.bf16.xpose.msra.mxu0 %v6254_v56  ;;  %6122 = vmatpush3.msra.mxu1 %v4537_v2  ;;  %v6514_v56 = vmov 0  }
 0x918   :  { %6097 = vmatprep.mubr.msk.f32.mxu0 %vm6511_vm0, %v6512_v1  ;;  %6259 = vmatprep.subr.bf16.mxu0 %v6510_v0 }
 0x919   :  { %6265 = vmatprep.subr.bf16.mxu1 %v6510_v0  ;;  %6374 = vset.pattern.permute.xlu0 %v6514_v56 }
 0x91e   :  { %6098 = vmatmul.mubr.f32.vlgmr.msra.gmra.mrb[20].mxu0 %v4009_v16 }
 0x91f   :  { %6261 = vmatpush3.bf16.xpose.msra.mxu0 %v6260_v21  ;;  %6111 = vmatprep.mubr.msk.f32.mxu0 %vm6511_vm0, %v6512_v1 }
 0x920   :  { %6126 = vmatprep.subr.mxu0 %v4627_v50  ;;  %6373 = vset.pattern.permute.xlu1 %v6514_v56 }
 0x926   :  { %6112 = vmatmul.mubr.f32.vlgmr.msra.gmra.mrb[22].mxu0 %v4008_v40 }
 0x927   :  { %6127 = vmatpush3.msra.mxu0 %v4627_v50 }
 0x928   :  { %6131 = vmatprep.subr.mxu0 %v4624_v46 }
 0x979   :  { %v4510_v22 = vpop.trf.xlu1 }
 0x97a   :  { %v4529_v13 = vsel %vm779_vm4, %v4510_v22, 0 }
 0x97b   :  { %v4602_v24 = vand.u32 4294901760, %v4529_v13 }
 0x97d   :  { %v4603_v17 = vsub.f32 %v4529_v13, %v4602_v24  ;;  %v4511_v33 = vpop.trf.xlu1  ;;  %6128 = vmatprep.mubr.f32.mxu0 %v4602_v24 }
 0x97e   :  { %v4532_v27 = vsel %vm779_vm4, %v4511_v33, 0  ;;  %v6408_v33 = vld [vmem:[#allocation5 + $0x10] sm:$0xff] }
 0x97f   :  { %v4604_v34 = vand.u32 4294901760, %v4603_v17  ;;  %v4612_v16 = vand.u32 4294901760, %v4532_v27 }
 0x981   :  { %v4613_v35 = vsub.f32 %v4532_v27, %v4612_v16  ;;  %6129 = vmatmul.mubr.f32.vlgmr.msra.gmra.mrb[24].mxu0 %v4612_v16  ;;  %v4605_v19 = vsub.f32 %v4603_v17, %v4604_v34 }
 0x982   :  { %6132 = vmatpush3.msra.mxu0 %v4624_v46  ;;  %6133 = vmatprep.mubr.f32.mxu0 %v4603_v17 }
 0x983   :  { %v4614_v39 = vand.u32 4294901760, %v4613_v35  ;;  %6136 = vmatprep.subr.mxu0 %v4537_v2  ;;  %v4606_v40 = vand.u32 4294901760, %v4605_v19 }
 0x985   :  { %v4615_v26 = vsub.f32 %v4613_v35, %v4614_v39  ;;  %6123 = vmatprep.mubr.f32.mxu1 %v4606_v40  ;;  %v4475_v40 = vpop.trf.xlu1 }
 0x987   :  { %v4616_v29 = vand.u32 4294901760, %v4615_v26 }
 0x989   :  { %6124 = vmatmul.mubr.f32.vlgmr.msra.gmra.mrb[24].mxu1 %v4616_v29  ;;  %6134 = vmatmul.mubr.f32.vlgmr.msra.gmra.mrb[24].mxu0 %v4613_v35  ;;  %v6410_v35 = vld [vmem:[#allocation5] sm:$0xff]  ;;  %v4476_v56 = vpop.trf.xlu1 }
 0x98a   :  { %6137 = vmatpush3.msra.mxu0 %v4537_v2  ;;  %6138 = vmatprep.mubr.f32.mxu0 %v4604_v34  ;;  %v6409_v34 = vld [vmem:[#allocation5 + $0x8] sm:$0xff] }
 0x98b   :  { %6141 = vmatprep.subr.mxu0 %v4625_v44  ;;  %6155 = vmatprep.mubr.msk.f32.mxu1 %vm6511_vm0, %v6512_v1 }
 0x991   :  { %6139 = vmatmul.mubr.f32.vlgmr.msra.gmra.mrb[24].mxu0 %v4614_v39 }
 0x992   :  { %6142 = vmatpush3.msra.mxu0 %v4625_v44  ;;  %6143 = vmatprep.mubr.f32.mxu0 %v4602_v24  ;;  %v4410_v44 = vpop.permute.xlu0 %4409 }
 0x993   :  { %6146 = vmatprep.subr.mxu0 %v4537_v2  ;;  %v4423_v19 = vmul.f32 %v6410_v35, %v4410_v44  ;;  %v7078_v35 = vld [vmem:[%s7414_s4 + $0x10] sm:$0xff] }
 0x996   :  { %v4414_v53 = vpop.permute.xlu0 %4413 }
 0x999   :  { %6144 = vmatmul.mubr.f32.vlgmr.msra.gmra.mrb[24].mxu0 %v4612_v16 }
 0x99a   :  { %6147 = vmatpush3.msra.mxu0 %v4537_v2  ;;  %6148 = vmatprep.mubr.f32.mxu0 %v4602_v24  ;;  %v4418_v22 = vpop.permute.xlu0 %4417  ;;  %v6407_v24 = vld [vmem:[#allocation5 + $0x18] sm:$0xff] }
 0x99b   :  { %6274 = vmatprep.subr.bf16.mxu0 %v6510_v0  ;;  %v4425_v27 = vmul.f32 %v6408_v33, %v4418_v22 }
 0x99d   :  { %v4428_v26 = vsel %vm674_vm5, %v4425_v27, 0.0 }
 0x99e   :  { %v4422_v13 = vpop.permute.xlu0 %4421 }
 0x99f   :  { %v4426_v17 = vmul.f32 %v6407_v24, %v4422_v13 }
 0x9a1   :  { %6149 = vmatmul.mubr.f32.vlgmr.msra.gmra.mrb[24].mxu0 %v4612_v16  ;;  %v4424_v16 = vmul.f32 %v6409_v34, %v4414_v53  ;;  %v4431_v39 = vsel %vm674_vm5, %v4426_v17, 0.0  ;;  %v7061_v17 = vld [vmem:[%s7414_s4] sm:$0xff] }
 0x9a2   :  { %6176 = vmatprep.mubr.msk.f32.mxu0 %vm6511_vm0, %v6512_v1  ;;  %v3819_v27 = vmul.f32 %v7017_v30, %v7061_v17 }
 0x9a3   :  { %v4430_v29 = vsel %vm674_vm5, %v4424_v16, 0.0 }
 0x9a4   :  { %v3827_v34 = vsel %vm674_vm5, %v3819_v27, 0.0  ;;  %v2573_v27 = vmul.f32 %v6916_v31, %v7061_v17 }
 0x9e1   :  { %v7042_v11 = vpop.f32.mrb[16].mxu0  ;;  %v7044_v42 = vpop.f32.mrb[20].mxu1 }
 0x9e2   :  { %v6085_v32 = vpop.f32.mrb[17].mxu0  ;;  %v6106_v4 = vpop.f32.mrb[21].mxu1 }
 0x9e3   :  { %v4427_v32 = vsel %vm674_vm5, %v4423_v19, 0.0  ;;  %v4432_v4 = vadd.f32 %v4431_v39, %v4430_v29  ;;  %v3821_v39 = vmul.f32 %v7017_v30, %v7078_v35 }
 0x9e9   :  { %v7046_v23 = vpop.f32.mrb[18].mxu0  ;;  %v7048_v52 = vpop.f32.mrb[22].mxu1 }
 0x9ea   :  { %v6092_v36 = vpop.f32.mrb[19].mxu0  ;;  %v6120_v62 = vpop.f32.mrb[23].mxu1 }
 0x9eb   :  { %v4429_v36 = vadd.f32 %v4428_v26, %v4427_v32  ;;  %v3833_v26 = vsel %vm674_vm5, %v3821_v39, 0.0  ;;  %v7094_v32 = vld [vmem:[%s7414_s4 + $0x20] sm:$0xff] }
 0x9f1   :  { %v7050_v48 = vpop.f32.mrb[20].mxu0 }
 0x9f2   :  { %v6099_v61 = vpop.f32.mrb[21].mxu0 }
 0x9f9   :  { %v7052_v2 = vpop.f32.mrb[22].mxu0 }
 0x9fa   :  { %v6113_v46 = vpop.f32.mrb[23].mxu0 }
 0xa5c   :  { %v6125_v21 = vpop.f32.mrb[24].mxu1 }
 0xa5d   :  { %v4608_v50 = vpop.f32.mrb[25].mxu1  ;;  %v4619_v62 = vadd.f32 %v6125_v21, %v4432_v4 }
 0xa5e   :  { %v4609_v61 = vadd.f32 %v4608_v50, %v4429_v36  ;;  %v7070_v50 = vld [vmem:[%s7414_s4 + $0x8] sm:$0xff]  ;;  %v3823_v36 = vmul.f32 %v7017_v30, %v7094_v32 }
 0xa5f   :  { %v3820_v16 = vmul.f32 %v7011_v60, %v7070_v50  ;;  %v1303_v57 = vmul.f32 %v6830_v14, %v7070_v50 }
 0xa61   :  { %v3830_v19 = vsel %vm674_vm5, %v3820_v16, 0.0 }
 0xa74   :  { %v6150_v46 = vpop.f32.mrb[24].mxu0 }
 0xa75   :  { %v6290_v22 = vadd.f32 %v6150_v46, %v4619_v62  ;;  %v5015_v13 = vpop.f32.mrb[25].mxu0  ;;  %v7102_v62 = vld [vmem:[%s7414_s4 + $0x28] sm:$0xff] }
 0xa76   :  { %v6292_v53 = vadd.f32 %v5015_v13, %v4609_v61  ;;  %v3839_v61 = vsel %vm674_vm5, %v3823_v36, 0.0  ;;  %v3824_v46 = vmul.f32 %v7011_v60, %v7102_v62  ;;  %v1307_v49 = vmul.f32 %v6830_v14, %v7102_v62 }
 0xa77   :  { %v5026_v24 = vadd.f32 %v6290_v22, %v4476_v56  ;;  %v7110_v56 = vld [vmem:[%s7414_s4 + $0x30] sm:$0xff] }
 0xa78   :  { %v5025_v44 = vadd.f32 %v6292_v53, %v4475_v40  ;;  %v7086_v40 = vld [vmem:[%s7414_s4 + $0x18] sm:$0xff]  ;;  %v3842_v22 = vsel %vm674_vm5, %v3824_v46, 0.0  ;;  %v3825_v13 = vmul.f32 %v7017_v30, %v7110_v56 }
 0xa79   :  { %v5030_v33 = vsel %vm674_vm5, %v5026_v24, -inf  ;;  %v3822_v29 = vmul.f32 %v7011_v60, %v7086_v40 }
 0xa7a   :  { %5031 = vmax.xlane.f32.xlu1 %v5030_v33  ;;  %v5027_v21 = vsel %vm674_vm5, %v5025_v44, -inf  ;;  %v3845_v53 = vsel %vm674_vm5, %v3825_v13, 0.0  ;;  %v645_v33 = vld [vmem:[%s7415_s5] sm:$0xff] }
 0xa7b   :  { %5028 = vmax.xlane.f32.xlu0 %v5027_v21  ;;  %v3836_v4 = vsel %vm674_vm5, %v3822_v29, 0.0  ;;  %v2581_v21 = vsel %vm674_vm5, %v2573_v27, 0.0 }
 0xa7e   :  { %3828 = vadd.xlane.f32.xlu1 %v3827_v34 }
 0xa82   :  { %3831 = vadd.xlane.f32.xlu1 %v3830_v19 }
 0xa86   :  { %3834 = vadd.xlane.f32.xlu1 %v3833_v26 }
 0xa8a   :  { %3837 = vadd.xlane.f32.xlu1 %v3836_v4 }
 0xa8e   :  { %3840 = vadd.xlane.f32.xlu1 %v3839_v61 }
 0xa92   :  { %3843 = vadd.xlane.f32.xlu1 %v3842_v22  ;;  %v1302_v22 = vmul.f32 %v6825_v9, %v7061_v17 }
 0xa94   :  { %v1310_v13 = vsel %vm674_vm5, %v1302_v22, 0.0 }
 0xa96   :  { %3846 = vadd.xlane.f32.xlu1 %v3845_v53  ;;  %v1304_v53 = vmul.f32 %v6825_v9, %v7078_v35 }
 0xaa7   :  { %1336 = vperm.xlu1 %6373, %v645_v33   ;;  %v1305_v33 = vmul.f32 %v6830_v14, %v7086_v40 }
 0xaa9   :  { %v1319_v27 = vsel %vm674_vm5, %v1305_v33, 0.0 }
 0xacb   :  { %2582 = vadd.xlane.f32.xlu1 %v2581_v21  ;;  %v2574_v21 = vmul.f32 %v6910_v6, %v7070_v50 }
 0xb07   :  { %v5032_v34 = vpop.xlane.xlu1 %5031 }
 0xb08   :  { %v5034_v16 = vsub.f32 %v5026_v24, %v5032_v34  ;;  %v5029_v19 = vpop.xlane.xlu0 %5028  ;;  %v7130_v24 = vld [vmem:[%s7414_s4 + $0x38] sm:$0xff]  ;;  %v2584_v34 = vsel %vm674_vm5, %v2574_v21, 0.0 }
 0xb09   :  { %v5033_v39 = vsub.f32 %v5025_v44, %v5029_v19  ;;  %v3826_v44 = vmul.f32 %v7011_v60, %v7130_v24  ;;  %v1316_v60 = vsel %vm674_vm5, %v1304_v53, 0.0 }
 0xb0a   :  { %v5037_v30 = vmul.f32 1.442695, %v5034_v16  ;;  %v2575_v16 = vmul.f32 %v6916_v31, %v7078_v35 }
 0xb0b   :  { %v5035_v26 = vmul.f32 1.442695, %v5033_v39  ;;  %v3848_v46 = vsel %vm674_vm5, %v3826_v44, 0.0 }
 0xb0c   :  { %6399 = vpow2.f32 %v5037_v30  ;;  %v2587_v19 = vsel %vm674_vm5, %v2575_v16, 0.0 }
 0xb0d   :  { %6401 = vpow2.f32 %v5035_v26  ;;  %v7153_v26 = vpop.xlane.xlu1 %3828 }
 0xb16   :  { %v6400_v29 = vpop.eup %6399 }
 0xb17   :  { %v5042_v4 = vsel %vm674_vm5, %v6400_v29, 0.0  ;;  %v6402_v36 = vpop.eup %6401 }
 0xb18   :  { %5043 = vadd.xlane.f32.xlu0 %v5042_v4  ;;  %v5039_v61 = vsel %vm674_vm5, %v6402_v36, 0.0 }
 0xb1c   :  { %5040 = vadd.xlane.f32.xlu0 %v5039_v61 }
 0xb32   :  { %5089 = vrot.lane.b32.xlu0 %v2633_v51, %s6513_s1  ;;  %v1313_v51 = vsel %vm674_vm5, %v1303_v57, 0.0 }
 0xb51   :  { %3849 = vadd.xlane.f32.xlu0 %v3848_v46 }
 0xb55   :  { %1311 = vadd.xlane.f32.xlu0 %v1310_v13  ;;  %v7158_v13 = vpop.xlane.xlu1 %3831 }
 0xb59   :  { %1314 = vadd.xlane.f32.xlu0 %v1313_v51 }
 0xb5d   :  { %1317 = vadd.xlane.f32.xlu0 %v1316_v60 }
 0xb61   :  { %1320 = vadd.xlane.f32.xlu0 %v1319_v27 }
 0xb65   :  { %2585 = vadd.xlane.f32.xlu0 %v2584_v34 }
 0xb69   :  { %2588 = vadd.xlane.f32.xlu0 %v2587_v19 }
 0xba5   :  { %v5044_v39 = vpop.xlane.xlu0 %5043 }
 0xba6   :  { %6403 = vrcp.f32 %v5044_v39  ;;  %v7175_v39 = vpop.xlane.xlu1 %3834 }
 0xba9   :  { %v5041_v30 = vpop.xlane.xlu0 %5040 }
 0xbaa   :  { %6405 = vrcp.f32 %v5041_v30 }
 0xbad   :  { %v5090_v4 = vpop.permute.xlu0 %5089 }
 0xbae   :  { %v5163_v61 = vsel %vm674_vm5, %v5090_v4, 0  ;;  %v2576_v4 = vmul.f32 %v6910_v6, %v7086_v40 }
 0xbaf   :  { %v7156_v46 = vand.u32 4294901760, %v5163_v61 }
 0xbb0   :  { %v6404_v44 = vpop.eup %6403 }
 0xbb1   :  { %v5048_v22 = vmul.f32 %v6404_v44, %v6400_v29  ;;  %v7163_v60 = vsub.f32 %v5163_v61, %v7156_v46 }
 0xbb3   :  { %v5056_v57 = vmul.f32 %v5048_v22, %v7130_v24  ;;  %v5050_v51 = vmul.f32 %v5048_v22, %v7070_v50  ;;  %v5169_v33 = vsel %vm674_vm5, %v5048_v22, 0  ;;  %v5052_v29 = vmul.f32 %v5048_v22, %v7086_v40 }
 0xbb4   :  { %v6406_v53 = vpop.eup %6405  ;;  %v5175_v16 = vand.u32 4294901760, %v5169_v33  ;;  %v5240_v61 = vand.u32 4294901760, %v7163_v60  ;;  %v1306_v40 = vmul.f32 %v6825_v9, %v7094_v32 }
 0xbb5   :  { %v7166_v27 = vmul.f32 %v6406_v53, %v6402_v36  ;;  %v5078_v21 = vsel %vm674_vm5, %v5056_v57, 0.0  ;;  %v5060_v34 = vsel %vm674_vm5, %v5050_v51, 0.0  ;;  %v5066_v44 = vsel %vm674_vm5, %v5052_v29, 0.0 }
 0xbb6   :  { %5079 = vadd.xlane.f32.xlu0 %v5078_v21  ;;  %5061 = vadd.xlane.f32.xlu1 %v5060_v34  ;;  %v7177_v36 = vsub.f32 %v5169_v33, %v5175_v16  ;;  %v5054_v51 = vmul.f32 %v5048_v22, %v7102_v62  ;;  %v5241_v29 = vsub.f32 %v7163_v60, %v5240_v61 }
 0xbb7   :  { %v5049_v50 = vmul.f32 %v7166_v27, %v7061_v17  ;;  %v5166_v19 = vsel %vm674_vm5, %v7166_v27, 0  ;;  %v5051_v18 = vmul.f32 %v7166_v27, %v7078_v35  ;;  %v2577_v35 = vmul.f32 %v6916_v31, %v7094_v32 }
 0xbb8   :  { %v5172_v30 = vand.u32 4294901760, %v5166_v19  ;;  %v5258_v21 = vand.u32 4294901760, %v7177_v36  ;;  %v5072_v22 = vsel %vm674_vm5, %v5054_v51, 0.0  ;;  %v5242_v51 = vand.u32 4294901760, %v5241_v29 }
 0xbb9   :  { %v5057_v57 = vsel %vm674_vm5, %v5049_v50, 0.0  ;;  %v2590_v50 = vsel %vm674_vm5, %v2576_v4, 0.0  ;;  %v5053_v29 = vmul.f32 %v7166_v27, %v7094_v32 }
 0xbba   :  { %5067 = vadd.xlane.f32.xlu1 %v5066_v44  ;;  %5058 = vadd.xlane.f32.xlu0 %v5057_v57  ;;  %v6266_v17 = vpack.c.bf16 %v5175_v16, %v5172_v30  ;;  %v7185_v53 = vsub.f32 %v5166_v19, %v5172_v30  ;;  %v5259_v34 = vsub.f32 %v7177_v36, %v5258_v21  ;;  %v7199_v19 = vpop.xlane.xlu1 %3837  ;;  %v1322_v44 = vsel %vm674_vm5, %v1306_v40, 0.0 }
 0xbbb   :  { %v2579_v16 = vmul.f32 %v6916_v31, %v7110_v56  ;;  %v5063_v40 = vsel %vm674_vm5, %v5051_v18, 0.0  ;;  %v5055_v18 = vmul.f32 %v7166_v27, %v7110_v56 }
 0xbbc   :  { %6267 = vmatpush3.bf16.xpose.msra.mxu1 %v6266_v17  ;;  %6276 = vmatpush3.bf16.xpose.msra.mxu0 %v6266_v17  ;;  %v5251_v33 = vand.u32 4294901760, %v7185_v53  ;;  %v5260_v20 = vand.u32 4294901760, %v5259_v34  ;;  %v1325_v34 = vsel %vm674_vm5, %v1307_v49, 0.0  ;;  %v2593_v49 = vsel %vm674_vm5, %v2577_v35, 0.0 }
 0xbbd   :  { %6268 = vmatprep.subr.bf16.mxu1 %v6510_v0  ;;  %6280 = vmatprep.subr.bf16.mxu0 %v6510_v0  ;;  %v2599_v4 = vsel %vm674_vm5, %v2579_v16, 0.0  ;;  %v6272_v32 = vpack.c.bf16 %v7177_v36, %v7185_v53  ;;  %v7422_v35 = vsub.s32 5, %v6676_v41 }
 0xbbe   :  { %5073 = vadd.xlane.f32.xlu1 %v5072_v22  ;;  %2591 = vadd.xlane.f32.xlu0 %v2590_v50  ;;  %v5252_v30 = vsub.f32 %v7185_v53, %v5251_v33  ;;  %v3841_v22 = vpop.xlane.xlu1 %3840  ;;  %v1309_v53 = vmul.f32 %v6830_v14, %v7130_v24  ;;  %v6278_v50 = vpack.c.bf16 %v5258_v21, %v5251_v33 }
 0xbc0   :  { %v5253_v57 = vand.u32 4294901760, %v5252_v30 }
 0xbc2   :  { %2600 = vadd.xlane.f32.xlu1 %v2599_v4  ;;  %1323 = vadd.xlane.f32.xlu0 %v1322_v44  ;;  %v6269_v55 = vpack.c.bf16 %v5260_v20, %v5253_v57  ;;  %v2578_v20 = vmul.f32 %v6910_v6, %v7102_v62  ;;  %v3844_v31 = vpop.xlane.xlu1 %3843  ;;  %v1308_v62 = vmul.f32 %v6825_v9, %v7110_v56  ;;  %v1331_v9 = vsel %vm674_vm5, %v1309_v53, 0.0 }
 0xbc3   :  { %6156 = vmatmul.mubr.f32.vlgmr.msra.gmra.mrb[26].mxu1 %v5242_v51  ;;  %6177 = vmatmul.mubr.f32.vlgmr.msra.gmra.mrb[26].mxu0 %v5240_v61  ;;  %v5075_v61 = vsel %vm674_vm5, %v5055_v18, 0.0 }
 0xbc4   :  { %6270 = vmatpush3.bf16.xpose.msra.mxu1 %v6269_v55  ;;  %6282 = vmatpush3.bf16.xpose.msra.mxu0 %v6266_v17  ;;  %v5069_v55 = vsel %vm674_vm5, %v5053_v29, 0.0  ;;  %v2596_v27 = vsel %vm674_vm5, %v2578_v20, 0.0  ;;  %v1328_v17 = vsel %vm674_vm5, %v1308_v62, 0.0 }
 0xbc5   :  { %6162 = vmatprep.mubr.msk.f32.mxu1 %vm6511_vm0, %v6512_v1  ;;  %6190 = vmatprep.mubr.msk.f32.mxu0 %vm6511_vm0, %v6512_v1 }
 0xbc6   :  { %5064 = vadd.xlane.f32.xlu1 %v5063_v40  ;;  %1326 = vadd.xlane.f32.xlu0 %v1325_v34  ;;  %v3847_v36 = vpop.xlane.xlu1 %3846 }
 0xbc7   :  { %6271 = vmatprep.subr.bf16.mxu1 %v6510_v0 }
 0xbca   :  { %5070 = vadd.xlane.f32.xlu1 %v5069_v55  ;;  %2594 = vadd.xlane.f32.xlu0 %v2593_v49  ;;  %v1337_v56 = vpop.permute.xlu1 %1336 }
 0xbcb   :  { %6163 = vmatmul.mubr.f32.vlgmr.msra.gmra.mrb[28].mxu1 %v7156_v46  ;;  %6191 = vmatmul.mubr.f32.vlgmr.msra.gmra.mrb[28].mxu0 %v7156_v46  ;;  %v7248_v14 = vrot.slane %v1337_v56, %v650_v63  ;;  %v7263_v63 = vrot.slane %v1337_v56, %v1348_v25  ;;  %v7281_v55 = vrot.slane %v1337_v56, %v7422_v35 }
 0xbcc   :  { %6273 = vmatpush3.bf16.xpose.msra.mxu1 %v6272_v32  ;;  %6169 = vmatprep.mubr.msk.f32.mxu1 %vm6511_vm0, %v6512_v1 }
 0xbcd   :  { %6277 = vmatprep.subr.bf16.mxu1 %v6510_v0  ;;  %v2580_v0 = vmul.f32 %v6910_v6, %v7130_v24  ;;  %v3856_v21 = vmul.f32 %v3844_v31, %v7263_v63  ;;  %v7423_v31 = vsub.s32 6, %v6676_v41 }
 0xbce   :  { %5076 = vadd.xlane.f32.xlu1 %v5075_v61  ;;  %2597 = vadd.xlane.f32.xlu0 %v2596_v27  ;;  %v2583_v51 = vpop.xlane.xlu1 %2582 }
 0xbcf   :  { %v2602_v16 = vsel %vm674_vm5, %v2580_v0, 0.0  ;;  %v7286_v32 = vrot.slane %v1337_v56, %v7423_v31 }
 0xbd2   :  { %1329 = vadd.xlane.f32.xlu0 %v1328_v17  ;;  %v7424_v17 = vsub.s32 7, %v6676_v41 }
 0xbd3   :  { %6170 = vmatmul.mubr.f32.vlgmr.msra.gmra.mrb[30].mxu1 %v7163_v60  ;;  %v3851_v60 = vmul.f32 %v7153_v26, %v7248_v14  ;;  %v7267_v26 = vrot.slane %v1337_v56, %v1352_v28 }
 0xbd4   :  { %6279 = vmatpush3.bf16.xpose.msra.mxu1 %v6278_v50  ;;  %6183 = vmatprep.mubr.msk.f32.mxu1 %vm6511_vm0, %v6512_v1  ;;  %v7255_v1 = vrot.slane %v1337_v56, %v661_v3  ;;  %v3855_v3 = vmul.f32 %v3841_v22, %v7263_v63  ;;  %v7421_v22 = vsub.s32 4, %v6676_v41  ;;  %v7291_v53 = vrot.slane %v1337_v56, %v7424_v17 }
 0xbd6   :  { %1332 = vadd.xlane.f32.xlu0 %v1331_v9  ;;  %v3853_v6 = vmul.f32 %v7175_v39, %v7255_v1  ;;  %v3854_v24 = vmul.f32 %v7199_v19, %v7255_v1  ;;  %v3852_v39 = vmul.f32 %v7158_v13, %v7248_v14  ;;  %v2608_v13 = vrot.slane %v1337_v56, %v7421_v22 }
 0xbda   :  { %2603 = vadd.xlane.f32.xlu0 %v2602_v16 }
 0xbdb   :  { %6184 = vmatmul.mubr.f32.vlgmr.msra.gmra.mrb[32].mxu1 %v7156_v46  ;;  %v3857_v46 = vmul.f32 %v3847_v36, %v7267_v26 }
 0xbde   :  { %v3850_v33 = vpop.xlane.xlu0 %3849 }
 0xbdf   :  { %3870 = vperm.xlu1 %6373, %v3851_v60   ;;  %v3858_v25 = vmul.f32 %v3850_v33, %v7267_v26  ;;  %v2625_v33 = vmul.f32 %v2608_v13, %v2583_v51 }
 0xbe2   :  { %v1312_v19 = vpop.xlane.xlu0 %1311 }
 0xbe3   :  { %3876 = vperm.xlu1 %6373, %v3853_v6   ;;  %v1358_v6 = vmul.f32 %v7248_v14, %v1312_v19 }
 0xbe6   :  { %v1315_v28 = vpop.xlane.xlu0 %1314 }
 0xbe7   :  { %3879 = vperm.xlu1 %6373, %v3854_v24  }
 0xbea   :  { %v1318_v30 = vpop.xlane.xlu0 %1317 }
 0xbeb   :  { %3882 = vperm.xlu1 %6373, %v3855_v3   ;;  %v1360_v41 = vmul.f32 %v7255_v1, %v1318_v30 }
 0xbee   :  { %v1321_v44 = vpop.xlane.xlu0 %1320 }
 0xbef   :  { %3888 = vperm.xlu1 %6373, %v3857_v46  }
 0xbf0   :  { %3873 = vperm.xlu0 %6374, %v3852_v39  }
 0xbf2   :  { %v7275_v57 = vpop.xlane.xlu0 %2585 }
 0xbf4   :  { %3885 = vperm.xlu0 %6374, %v3856_v21  }
 0xbf6   :  { %v2589_v4 = vpop.xlane.xlu0 %2588 }
 0xbf8   :  { %3891 = vperm.xlu0 %6374, %v3858_v25  }
 0xc43   :  { %v5062_v40 = vpop.xlane.xlu1 %5061  ;;  %v5080_v34 = vpop.xlane.xlu0 %5079 }
 0xc44   :  { %v5082_v29 = vmul.f32 %v5062_v40, %v2608_v13  ;;  %v5088_v0 = vmul.f32 %v5080_v34, %v7291_v53  ;;  %v5652_v40 = vld [vmem:[%s7415_s5 + $0x8] sm:$0xff]  ;;  %v2627_v34 = vmul.f32 %v7281_v55, %v2589_v4  ;;  %s6515_s5 = smov 16  }
 0xc46   :  { %5103 = vperm.xlu1 %6373, %v5082_v29   ;;  %v1359_v29 = vmul.f32 %v7248_v14, %v1315_v28  ;;  %v2626_v28 = vmul.f32 %v2608_v13, %v7275_v57 }
 0xc47   :  { %v5068_v49 = vpop.xlane.xlu1 %5067  ;;  %v5059_v18 = vpop.xlane.xlu0 %5058 }
 0xc48   :  { %v5084_v20 = vmul.f32 %v5068_v49, %v7281_v55  ;;  %v5081_v62 = vmul.f32 %v5059_v18, %v2608_v13  ;;  %v1361_v18 = vmul.f32 %v7255_v1, %v1321_v44 }
 0xc4a   :  { %5109 = vperm.xlu1 %6373, %v5084_v20  }
 0xc4b   :  { %v5074_v61 = vpop.xlane.xlu1 %5073  ;;  %v2592_v27 = vpop.xlane.xlu0 %2591 }
 0xc4c   :  { %v5086_v36 = vmul.f32 %v5074_v61, %v7286_v32  ;;  %v2628_v44 = vmul.f32 %v7281_v55, %v2592_v27 }
 0xc4e   :  { %5115 = vperm.xlu0 %6374, %v5086_v36   ;;  %5100 = vperm.xlu1 %6373, %v5081_v62  }
 0xc4f   :  { %v2601_v50 = vpop.xlane.xlu1 %2600  ;;  %v1324_v9 = vpop.xlane.xlu0 %1323 }
 0xc50   :  { %v1362_v35 = vmul.f32 %v7263_v63, %v1324_v9  ;;  %v2631_v17 = vmul.f32 %v7291_v53, %v2601_v50 }
 0xc52   :  { %5121 = vperm.xlu0 %6374, %v5088_v0  }
 0xc53   :  { %v5065_v16 = vpop.xlane.xlu1 %5064  ;;  %v1327_v60 = vpop.xlane.xlu0 %1326 }
 0xc54   :  { %v5083_v24 = vmul.f32 %v5065_v16, %v7281_v55 }
 0xc56   :  { %1375 = vperm.xlu0 %6374, %v1358_v6   ;;  %5106 = vperm.xlu1 %6373, %v5083_v24   ;;  %v1363_v6 = vmul.f32 %v7263_v63, %v1327_v60 }
 0xc57   :  { %v5071_v3 = vpop.xlane.xlu1 %5070  ;;  %v2595_v46 = vpop.xlane.xlu0 %2594 }
 0xc58   :  { %v5085_v56 = vmul.f32 %v5071_v3, %v7286_v32  ;;  %v2629_v20 = vmul.f32 %v7286_v32, %v2595_v46 }
 0xc5a   :  { %1381 = vperm.xlu0 %6374, %v1360_v41   ;;  %5112 = vperm.xlu1 %6373, %v5085_v56  }
 0xc5b   :  { %v5077_v39 = vpop.xlane.xlu1 %5076  ;;  %v2598_v21 = vpop.xlane.xlu0 %2597 }
 0xc5c   :  { %v5087_v25 = vmul.f32 %v5077_v39, %v7291_v53  ;;  %v2630_v41 = vmul.f32 %v7286_v32, %v2598_v21 }
 0xc5e   :  { %2643 = vperm.xlu0 %6374, %v2625_v33   ;;  %5118 = vperm.xlu1 %6373, %v5087_v25  }
 0xc5f   :  { %v3871_v19 = vpop.permute.xlu1 %3870  ;;  %v1330_v22 = vpop.xlane.xlu0 %1329 }
 0xc60   :  { %v1364_v62 = vmul.f32 %v7267_v26, %v1330_v22  ;;  %v3896_v9 = vrot.slane %v3871_v19, %v6679_v43 }
 0xc62   :  { %2649 = vperm.xlu0 %6374, %v2627_v34   ;;  %1915 = vperm.xlu1 %6373, %v5652_v40  }
 0xc63   :  { %v3877_v30 = vpop.permute.xlu1 %3876  ;;  %v1333_v51 = vpop.xlane.xlu0 %1332 }
 0xc64   :  { %v3905_v31 = vrot.slane %v3877_v30, %v6679_v43  ;;  %v1365_v33 = vmul.f32 %v7267_v26, %v1333_v51 }
 0xc66   :  { %1378 = vperm.xlu1 %6373, %v1359_v29   ;;  %1387 = vperm.xlu0 %6374, %v1362_v35  }
 0xc67   :  { %v3880_v49 = vpop.permute.xlu1 %3879  ;;  %v2604_v14 = vpop.xlane.xlu0 %2603 }
 0xc68   :  { %v3909_v4 = vrot.slane %v3880_v49, %v6682_v45  ;;  %v2632_v22 = vmul.f32 %v7291_v53, %v2604_v14 }
 0xc6a   :  { %v3910_v61 = vsel %vm1409_vm6, %v3909_v4, %v3905_v31  ;;  %1384 = vperm.xlu1 %6373, %v1361_v18   ;;  %2655 = vperm.xlu0 %6374, %v2629_v20  }
 0xc6b   :  { %v3883_v36 = vpop.permute.xlu1 %3882 }
 0xc6c   :  { %v3914_v24 = vrot.slane %v3883_v36, %v6679_v43 }
 0xc6e   :  { %2646 = vperm.xlu1 %6373, %v2626_v28   ;;  %1393 = vperm.xlu0 %6374, %v1364_v62  }
 0xc6f   :  { %v3874_v1 = vpop.permute.xlu0 %3873  ;;  %v3889_v27 = vpop.permute.xlu1 %3888 }
 0xc70   :  { %v3900_v0 = vrot.slane %v3874_v1, %v6682_v45  ;;  %v3923_v56 = vrot.slane %v3889_v27, %v6679_v43 }
 0xc72   :  { %v3901_v16 = vsel %vm1409_vm6, %v3900_v0, %v3896_v9  ;;  %2652 = vperm.xlu1 %6373, %v2628_v44   ;;  %2661 = vperm.xlu0 %6374, %v2631_v17  }
 0xc73   :  { %v3929_v57 = vsel %vm1438_vm7, %v3910_v61, %v3901_v16  ;;  %v3886_v13 = vpop.permute.xlu0 %3885 }
 0xc74   :  { %v3918_v55 = vrot.slane %v3886_v13, %v6682_v45 }
 0xc76   :  { %v3919_v50 = vsel %vm1409_vm6, %v3918_v55, %v3914_v24  ;;  %1390 = vperm.xlu1 %6373, %v1363_v6  }
 0xc77   :  { %v3930_v3 = vsel %vm1440_vm8, %v3919_v50, %v3929_v57  ;;  %v3892_v46 = vpop.permute.xlu0 %3891 }
 0xc78   :  { %v3927_v39 = vrot.slane %v3892_v46, %v6682_v45 }
 0xc7a   :  { %v3928_v63 = vsel %vm1409_vm6, %v3927_v39, %v3923_v56  ;;  %2658 = vperm.xlu1 %6373, %v2630_v41  }
 0xc7b   :  { %v3931_v60 = vsel %vm1442_vm9, %v3928_v63, %v3930_v3 }
 0xc7c   :  { %v4015_v25 = vadd.f32 %v7042_v11, %v3931_v60 }
 0xc7e   :  { %v4096_v19 = vadd.f32 %v7046_v23, %v4015_v25  ;;  %1396 = vperm.xlu1 %6373, %v1365_v33  }
 0xc80   :  { %v4172_v32 = vadd.f32 %v7050_v48, %v4096_v19 }
 0xc82   :  { %2664 = vperm.xlu1 %6373, %v2632_v22   ;;  %v4247_v21 = vadd.f32 %v7044_v42, %v4172_v32 }
 0xc84   :  { %v4324_v40 = vadd.f32 %v7052_v2, %v4247_v21 }
 0xc86   :  { %v4397_v34 = vadd.f32 %v7048_v52, %v4324_v40 }
 0xc96   :  { %v5244_v30 = vpop.f32.mrb[26].mxu1  ;;  %v5476_v29 = vpop.f32.mrb[26].mxu0 }
 0xc97   :  { %v6157_v35 = vpop.f32.mrb[27].mxu1  ;;  %v6178_v26 = vpop.f32.mrb[27].mxu0 }
 0xc9e   :  { %v5325_v51 = vpop.f32.mrb[28].mxu1  ;;  %v5626_v11 = vpop.f32.mrb[28].mxu0 }
 0xc9f   :  { %v6164_v49 = vpop.f32.mrb[29].mxu1  ;;  %v6192_v23 = vpop.f32.mrb[29].mxu0 }
 0xca6   :  { %v5401_v18 = vpop.f32.mrb[30].mxu1 }
 0xca7   :  { %v6171_v20 = vpop.f32.mrb[31].mxu1 }
 0xcae   :  { %v5553_v53 = vpop.f32.mrb[32].mxu1 }
 0xcaf   :  { %v6185_v31 = vpop.f32.mrb[33].mxu1 }
 0xcc5   :  { %v5104_v48 = vpop.permute.xlu1 %5103 }
 0xcc6   :  { %v5130_v2 = vrot.slane %v5104_v48, %v6682_v45 }
 0xcc9   :  { %v5110_v4 = vpop.permute.xlu1 %5109 }
 0xcca   :  { %v5139_v1 = vrot.slane %v5110_v4, %v6682_v45 }
 0xccd   :  { %v5101_v61 = vpop.permute.xlu1 %5100  ;;  %v5116_v42 = vpop.permute.xlu0 %5115 }
 0xcce   :  { %v5126_v52 = vrot.slane %v5101_v61, %v6679_v43  ;;  %v5148_v16 = vrot.slane %v5116_v42, %v6682_v45 }
 0xcd0   :  { %v5131_v14 = vsel %vm1409_vm6, %v5130_v2, %v5126_v52 }
 0xcd1   :  { %v5122_v28 = vpop.permute.xlu0 %5121 }
 0xcd2   :  { %v5157_v27 = vrot.slane %v5122_v28, %v6682_v45 }
 0xcd5   :  { %v5107_v62 = vpop.permute.xlu1 %5106  ;;  %v1376_v36 = vpop.permute.xlu0 %1375 }
 0xcd6   :  { %v5135_v44 = vrot.slane %v5107_v62, %v6679_v43  ;;  %v1403_v25 = vrot.slane %v1376_v36, %v6679_v43 }
 0xcd8   :  { %v5140_v17 = vsel %vm1409_vm6, %v5139_v1, %v5135_v44 }
 0xcd9   :  { %v5159_v9 = vsel %vm1438_vm7, %v5140_v17, %v5131_v14  ;;  %v5113_v0 = vpop.permute.xlu1 %5112  ;;  %v1382_v13 = vpop.permute.xlu0 %1381 }
 0xcda   :  { %v5144_v57 = vrot.slane %v5113_v0, %v6679_v43  ;;  %v1414_v26 = vrot.slane %v1382_v13, %v6679_v43 }
 0xcdc   :  { %v5149_v6 = vsel %vm1409_vm6, %v5148_v16, %v5144_v57 }
 0xcdd   :  { %v5160_v24 = vsel %vm1440_vm8, %v5149_v6, %v5159_v9  ;;  %v5119_v55 = vpop.permute.xlu1 %5118  ;;  %v2644_v41 = vpop.permute.xlu0 %2643 }
 0xcde   :  { %v5153_v50 = vrot.slane %v5119_v55, %v6679_v43  ;;  %v2669_v48 = vrot.slane %v2644_v41, %v6679_v43 }
 0xce0   :  { %v5158_v3 = vsel %vm1409_vm6, %v5157_v27, %v5153_v50 }
 0xce1   :  { %v5161_v46 = vsel %vm1442_vm9, %v5158_v3, %v5160_v24  ;;  %v7351_v56 = vpop.permute.xlu1 %1915  ;;  %v2650_v32 = vpop.permute.xlu0 %2649 }
 0xce2   :  { %v5245_v39 = vadd.f32 %v5244_v30, %v5161_v46  ;;  %v4400_v63 = vadd.f32 %v4397_v34, %v7351_v56  ;;  %v3173_v34 = vrot.slane %v7351_v56, 4  ;;  %v2678_v42 = vrot.slane %v2650_v32, %v6679_v43 }
 0xce4   :  { %v5326_v60 = vadd.f32 %v5325_v51, %v5245_v39  ;;  %4402 = vrot.lane.b32.xlu0 %v4400_v63, %s6515_s5 }
 0xce5   :  { %v1379_v33 = vpop.permute.xlu1 %1378  ;;  %v1388_v20 = vpop.permute.xlu0 %1387 }
 0xce6   :  { %v5402_v19 = vadd.f32 %v5401_v18, %v5326_v60  ;;  %v1408_v22 = vrot.slane %v1379_v33, %v6682_v45  ;;  %v1423_v62 = vrot.slane %v1388_v20, %v6679_v43 }
 0xce8   :  { %v5477_v21 = vadd.f32 %v5476_v29, %v5402_v19  ;;  %v1410_v40 = vsel %vm1409_vm6, %v1408_v22, %v1403_v25 }
 0xce9   :  { %v1385_v35 = vpop.permute.xlu1 %1384 }
 0xcea   :  { %v5554_v49 = vadd.f32 %v5553_v53, %v5477_v21  ;;  %v1418_v30 = vrot.slane %v1385_v35, %v6682_v45 }
 0xcec   :  { %v5627_v51 = vadd.f32 %v5626_v11, %v5554_v49  ;;  %v1419_v23 = vsel %vm1409_vm6, %v1418_v30, %v1414_v26  ;;  %v2656_v11 = vpop.permute.xlu0 %2655 }
 0xced   :  { %v1439_v18 = vsel %vm1438_vm7, %v1419_v23, %v1410_v40  ;;  %v2647_v31 = vpop.permute.xlu1 %2646  ;;  %v2687_v0 = vrot.slane %v2656_v11, %v6679_v43 }
 0xcee   :  { %v5630_v29 = vadd.f32 %v5627_v51, %v3173_v34  ;;  %v2673_v4 = vrot.slane %v2647_v31, %v6682_v45 }
 0xcf0   :  { %v2674_v61 = vsel %vm1409_vm6, %v2673_v4, %v2669_v48  ;;  %5632 = vrot.lane.b32.xlu1 %v5630_v29, %s6515_s5  ;;  %v1394_v44 = vpop.permute.xlu0 %1393 }
 0xcf1   :  { %v2653_v53 = vpop.permute.xlu1 %2652  ;;  %v1432_v24 = vrot.slane %v1394_v44, %v6679_v43 }
 0xcf2   :  { %v2682_v2 = vrot.slane %v2653_v53, %v6682_v45 }
 0xcf4   :  { %v2683_v52 = vsel %vm1409_vm6, %v2682_v2, %v2678_v42  ;;  %v2662_v27 = vpop.permute.xlu0 %2661 }
 0xcf5   :  { %v2702_v14 = vsel %vm1438_vm7, %v2683_v52, %v2674_v61  ;;  %v1391_v28 = vpop.permute.xlu1 %1390  ;;  %v2696_v41 = vrot.slane %v2662_v27, %v6679_v43 }
 0xcf6   :  { %v1427_v36 = vrot.slane %v1391_v28, %v6682_v45 }
 0xcf8   :  { %v1428_v1 = vsel %vm1409_vm6, %v1427_v36, %v1423_v62 }
 0xcf9   :  { %v1441_v17 = vsel %vm1440_vm8, %v1428_v1, %v1439_v18  ;;  %v2659_v9 = vpop.permute.xlu1 %2658 }
 0xcfa   :  { %v2691_v16 = vrot.slane %v2659_v9, %v6682_v45 }
 0xcfc   :  { %v2692_v57 = vsel %vm1409_vm6, %v2691_v16, %v2687_v0 }
 0xcfd   :  { %v2703_v13 = vsel %vm1440_vm8, %v2692_v57, %v2702_v14  ;;  %v1397_v6 = vpop.permute.xlu1 %1396 }
 0xcfe   :  { %v1436_v55 = vrot.slane %v1397_v6, %v6682_v45 }
 0xd00   :  { %v1437_v50 = vsel %vm1409_vm6, %v1436_v55, %v1432_v24 }
 0xd01   :  { %v1443_v3 = vsel %vm1442_vm9, %v1437_v50, %v1441_v17  ;;  %v2665_v46 = vpop.permute.xlu1 %2664 }
 0xd02   :  { %v1528_v39 = vadd.f32 %v6865_v8, %v1443_v3  ;;  %v2700_v63 = vrot.slane %v2665_v46, %v6682_v45 }
 0xd04   :  { %v1609_v60 = vadd.f32 %v6867_v59, %v1528_v39  ;;  %v2701_v33 = vsel %vm1409_vm6, %v2700_v63, %v2696_v41 }
 0xd05   :  { %v2704_v25 = vsel %vm1442_vm9, %v2701_v33, %v2703_v13 }
 0xd06   :  { %v1685_v19 = vadd.f32 %v6869_v5, %v1609_v60  ;;  %v2788_v22 = vadd.f32 %v6964_v58, %v2704_v25 }
 0xd08   :  { %v1760_v32 = vadd.f32 %v6871_v12, %v1685_v19  ;;  %v2869_v21 = vadd.f32 %v6968_v38, %v2788_v22 }
 0xd0a   :  { %v2945_v43 = vadd.f32 %v6970_v47, %v2869_v21  ;;  %v1837_v8 = vadd.f32 %v6873_v10, %v1760_v32 }
 0xd0c   :  { %v3020_v45 = vadd.f32 %v6972_v37, %v2945_v43  ;;  %v1910_v59 = vadd.f32 %v6875_v15, %v1837_v8 }
 0xd0e   :  { %v1918_v40 = vadd.f32 %v7351_v56, %v1910_v59  ;;  %v3097_v35 = vadd.f32 %v6966_v54, %v3020_v45 }
 0xd10   :  { %1920 = vst.msk [vmem:[#allocation8] sm:$0xf] %vm1919_vm10, %v1918_v40  ;;  %v3170_v5 = vadd.f32 %v6974_v7, %v3097_v35 }
 0xd12   :  { %v3175_v58 = vadd.f32 %v3173_v34, %v3170_v5 }
 0xd14   :  { %3176 = vst.msk [vmem:[#allocation8 + $0x4] sm:$0xf] %vm1919_vm10, %v3175_v58 }
 0xd56   :  { %v4403_v12 = vpop.permute.xlu0 %4402 }
 0xd57   :  { %4406 = vst.msk [vmem:[#allocation8] sm:$0xf] %vm4405_vm11, %v4403_v12 }
 0xd62   :  { %v5633_v10 = vpop.permute.xlu1 %5632 }
 0xd63   :  { %5635 = vst.msk [vmem:[#allocation8 + $0x4] sm:$0xf] %vm4405_vm11, %v5633_v10 }
 0xd64   :  { %6488 = shalt.err (!%p6485_p0)
}
 0xd65   :  { %s6489_s9 = scalar_lea.hbm %s7416_s6, 128 }
 0xd66   :  { %p6490_p1 = scmp.ne.s32.totalorder %s7416_s6, %s6489_s9  ;;  %p6493_p2 = scmp.lt.u32.totalorder %s6489_s9, %s7416_s6 }
 0xd68   :  { %p6495_p3 = pnand %p6493_p2, %p6490_p1 }
 0xd6a   :  { %6498 = shalt.err (!%p6495_p3)
}
 0xd6b   :  { %5645 = dma.vmem_to_hbm [thread:$0]  %s5643_s24, 128, %s7416_s6, [#allocation4]  }
 0xd6c   :  { %6503 = dma.done.wait [#allocation4], 128  }
 0xd6d   :  { %6504 = vsyncadd [#allocation4], 4294967168 }
 0xd6e   :  { %5649 = vsyncpa [#allocation3], 1 }
 0xd6f   :  { %5650 = vsyncpa [#allocation6], 1 }
 0xd70   :  { %5651 = vsyncpa [#allocation4], 1 }

</bundles_post_ra>
